<compile_context>
chip_gen: v5e
topology: v5e:2x2
jax: 0.10.0
libtpu: 0.0.40
codegen_flags: <defaults>
</compile_context>

<pallas_src>
import functools

import numpy as np
import jax
import jax.numpy as jnp
from jax import lax
from jax.experimental import pallas as pl
from jax.experimental.pallas import tpu as pltpu


_TAPS = tuple((ky, kx) for ky in range(3) for kx in range(3))


# ----------------------------------------------------------------------------
# Tiny per-block constants (resolution-linear, no O((H*W)^2) objects)
# ----------------------------------------------------------------------------
def _edge_masks(H, W):
    """(2, H*W) multiplicative masks zeroing the horizontal wrap-around of the
    kx=0 (left) and kx=2 (right) taps."""
    w = np.arange(H * W) % W
    return jnp.asarray(np.stack([(w >= 1), (w <= W - 2)]).astype(np.float32))


def _pool_selector(W):
    """(W-1, W//2) one-hot matrix picking the even-column anchors of a row of
    horizontal pair-maxes (the only remaining 'gather' of the max-pool)."""
    W2 = W // 2
    S = np.zeros((W - 1, W2), np.float32)
    S[2 * np.arange(W2), np.arange(W2)] = 1.0
    return jnp.asarray(S)


# ----------------------------------------------------------------------------
# Fused encoder kernel (one batch element per grid step)
# ----------------------------------------------------------------------------
def _encoder_kernel(block_dims, *refs):
    """refs = [x] + [w1,b1,w2,b2,mask,sel]*nb          (inputs)
            + [v_out] + [skip_0 .. skip_{nb-1}]        (outputs)
            + [pad_scratch, col_scratch]               (shared VMEM scratch)"""
    nb = len(block_dims)
    pos = 0
    x_ref = refs[pos]; pos += 1
    blk = [refs[pos + 6 * i: pos + 6 * (i + 1)] for i in range(nb)]
    pos += 6 * nb
    v_out_ref = refs[pos]; pos += 1
    skip_refs = refs[pos: pos + nb]; pos += nb
    pad_ref, col_ref = refs[pos], refs[pos + 1]

    # ---- place block-0 input: zero halos once, one lane-slice store ---------
    ci0, _, H0, W0 = block_dims[0]
    pad_ref[...] = jnp.zeros_like(pad_ref)
    pad_ref[0:ci0, W0 + 1:W0 + 1 + H0 * W0] = x_ref[0].astype(jnp.float32)

    for i, (cin, cout, H, W) in enumerate(block_dims):
        w1_ref, b1_ref, w2_ref, b2_ref, mask_ref, sel_ref = blk[i]
        HW = H * W
        mid = W + 1                                       # halo width each side

        if i > 0:
            # Re-zero only the halo lanes of this (smaller) geometry; the
            # pooled input written by the previous block sits in the middle.
            cb = max(cin, cout)
            pad_ref[0:cb, 0:mid] = jnp.zeros((cb, mid), jnp.float32)
            pad_ref[0:cb, mid + HW:mid + HW + mid] = jnp.zeros((cb, mid),
                                                               jnp.float32)

        def conv3x3_relu(c_in, w_ref, b_ref):
            # One load of the padded activation, 9 contiguous lane slices into
            # the bf16 im2col slab, one deep-K MXU matmul (f32 accumulate).
            vpad = pad_ref[0:c_in, 0:HW + 2 * mid]        # (c_in, HW+2W+2)
            for t, (ky, kx) in enumerate(_TAPS):
                off = ky * W + kx
                win = vpad[:, off:off + HW]               # (c_in, HW)
                if kx == 0:
                    win = win * mask_ref[0:1, :]          # kill left wrap
                elif kx == 2:
                    win = win * mask_ref[1:2, :]          # kill right wrap
                col_ref[t * c_in:(t + 1) * c_in, 0:HW] = win.astype(col_ref.dtype)
            acc = jnp.dot(w_ref[...], col_ref[0:9 * c_in, 0:HW],
                          preferred_element_type=jnp.float32)
            return jnp.maximum(acc + b_ref[...], 0.0)     # fused bias + ReLU

        h = conv3x3_relu(cin, w1_ref, b1_ref)             # relu(conv1(v))
        pad_ref[0:cout, mid:mid + HW] = h                 # becomes conv2 input
        skip = conv3x3_relu(cout, w2_ref, b2_ref)         # relu(conv2(h))
        skip_refs[i][0] = skip.astype(skip_refs[i].dtype)

        # ---- fused 2x2 / stride-2 max-pool (VPU pair maxes + tiny selector) -
        H2, W2 = H // 2, W // 2
        nmid = W2 + 1                                     # next-geometry offset
        # vertical pair max for every pixel: vert[:, p] = max(skip[p], skip[p+W])
        vert = jnp.maximum(skip[:, 0:HW - W], skip[:, W:HW])
        for k in range(H2):
            row = vert[:, 2 * k * W:2 * k * W + W]                  # (cout, W)
            hrow = jnp.maximum(row[:, 0:W - 1], row[:, 1:W])        # (cout, W-1)
            prow = jnp.dot(hrow, sel_ref[...],                      # (cout, W2)
                           preferred_element_type=jnp.float32)
            # write straight into next block's padded middle (already placed)
            pad_ref[0:cout, nmid + k * W2:nmid + (k + 1) * W2] = prow

    # final pooled activation = middle of the padded scratch at the last
    # "next" geometry
    c_l = block_dims[-1][1]
    Hl, Wl = block_dims[-1][2] // 2, block_dims[-1][3] // 2
    v_out_ref[0] = pad_ref[0:c_l, Wl + 1:Wl + 1 + Hl * Wl].astype(v_out_ref.dtype)


# ----------------------------------------------------------------------------
# Wrapper around pallas_call
# ----------------------------------------------------------------------------
def _bcast_spec(shape):
    zeros = (0,) * len(shape)
    return pl.BlockSpec(shape, lambda n, _z=zeros: _z)


def encoder_forward(x_nchw, params):
    """Pallas forward of the PyTorch Encoder.  x_nchw: (N, C0, H, W);
    params: list of {'w1','b1','w2','b2'} with conv weights in HWIO.
    Returns (v, skips) in NCHW with skips reversed, exactly like the module."""
    N, C0, H0, W0 = x_nchw.shape
    dt = x_nchw.dtype

    block_dims = []
    cin, H, W = C0, H0, W0
    for p in params:
        cout = p["w1"].shape[-1]
        assert H % 2 == 0 and W % 2 == 0, "even spatial dims required per level"
        block_dims.append((cin, cout, H, W))
        cin, H, W = cout, H // 2, W // 2
    block_dims = tuple(block_dims)
    c_last, h_last, w_last = cin, H, W

    ops = [x_nchw.reshape(N, C0, H0 * W0)]                 # free reshape
    in_specs = [pl.BlockSpec((1, C0, H0 * W0), lambda n: (n, 0, 0))]
    for (ci, co, h, w), p in zip(block_dims, params):
        w1 = jnp.transpose(p["w1"].reshape(9 * ci, co)).astype(jnp.bfloat16)
        w2 = jnp.transpose(p["w2"].reshape(9 * co, co)).astype(jnp.bfloat16)
        b1 = p["b1"].reshape(co, 1).astype(jnp.float32)
        b2 = p["b2"].reshape(co, 1).astype(jnp.float32)
        for a in (w1, b1, w2, b2, _edge_masks(h, w), _pool_selector(w)):
            ops.append(a)
            in_specs.append(_bcast_spec(a.shape))

    out_shape = [jax.ShapeDtypeStruct((N, c_last, h_last * w_last), dt)]
    out_specs = [pl.BlockSpec((1, c_last, h_last * w_last), lambda n: (n, 0, 0))]
    for (_, co, h, w) in block_dims:
        out_shape.append(jax.ShapeDtypeStruct((N, co, h * w), dt))
        out_specs.append(pl.BlockSpec((1, co, h * w), lambda n: (n, 0, 0)))

    # single padded-activation scratch + single bf16 im2col scratch, sized to
    # the largest block and reused by every conv of every block
    c_pad = max(max(ci, co) for (ci, co, _, _) in block_dims)
    hw_max = max(h * w for (_, _, h, w) in block_dims)
    hwp_max = max(h * w + 2 * (w + 1) for (_, _, h, w) in block_dims)
    scratch = [pltpu.VMEM((c_pad, hwp_max), jnp.float32),
               pltpu.VMEM((9 * c_pad, hw_max), jnp.bfloat16)]

    outs = pl.pallas_call(
        functools.partial(_encoder_kernel, block_dims),
        out_shape=tuple(out_shape),
        grid=(N,),
        in_specs=in_specs,
        out_specs=tuple(out_specs),
        scratch_shapes=tuple(scratch),
        compiler_params=pltpu.CompilerParams(
            dimension_semantics=("parallel",)),
    )(*ops)

    v = outs[0].reshape(N, c_last, h_last, w_last)         # free reshapes
    skips = [o.reshape(N, co, h, w)
             for o, (_, co, h, w) in zip(outs[1:], block_dims)]
    return v, skips[::-1]


# ----------------------------------------------------------------------------
# Parameter init + pure-JAX reference (mirrors the PyTorch module)
# ----------------------------------------------------------------------------
def init_conv(key, cin, cout):
    kw, kb = jax.random.split(key)
    fan_in = cin * 9
    bound = (1.0 / fan_in) ** 0.5
    w = jax.random.uniform(kw, (3, 3, cin, cout), jnp.float32, -bound, bound)
    b = jax.random.uniform(kb, (cout,), jnp.float32, -bound, bound)
    return w, b


def init_encoder(key, n_feat, channels):
    params = []
    c_prev = n_feat
    for c in channels:
        key, k1, k2 = jax.random.split(key, 3)
        w1, b1 = init_conv(k1, c_prev, c)
        w2, b2 = init_conv(k2, c, c)
        params.append(dict(w1=w1, b1=b1, w2=w2, b2=b2))
        c_prev = c
    return params


def encoder_reference(x_nchw, params):
    dn = ("NHWC", "HWIO", "NHWC")
    v = jnp.transpose(x_nchw, (0, 2, 3, 1))
    skips = []
    for p in params:
        h = jax.nn.relu(
            lax.conv_general_dilated(v, p["w1"], (1, 1), "SAME",
                                     dimension_numbers=dn) + p["b1"])
        skip = jax.nn.relu(
            lax.conv_general_dilated(h, p["w2"], (1, 1), "SAME",
                                     dimension_numbers=dn) + p["b2"])
        v = lax.reduce_window(skip, -jnp.inf, lax.max,
                              (1, 2, 2, 1), (1, 2, 2, 1), "VALID")
        skips.append(jnp.transpose(skip, (0, 3, 1, 2)))
    skips = skips[::-1]
    return jnp.transpose(v, (0, 3, 1, 2)), skips


if __name__ == "__main__":
    key = jax.random.PRNGKey(0)
    k_param, k_x = jax.random.split(key)

    n_feat = 4
    channels = [8, 16]
    x = jax.random.normal(k_x, (2, n_feat, 16, 16), dtype=jnp.float32)  # NCHW
    params = init_encoder(k_param, n_feat, channels)

    v, skips = jax.jit(encoder_forward)(x, params)
    v = jax.block_until_ready(v)
    skips = [jax.block_until_ready(s) for s in skips]

    v_ref, skips_ref = encoder_reference(x, params)
    assert v.shape == (2, channels[-1],
                       16 // (2 ** len(channels)), 16 // (2 ** len(channels)))
    # bf16 matmul operands with f32 accumulation -> loosened tolerance
    assert jnp.allclose(v, v_ref, atol=2e-2, rtol=2e-2)
    for s, sr in zip(skips, skips_ref):
        assert s.shape == sr.shape
        assert jnp.allclose(s, sr, atol=2e-2, rtol=2e-2)

    print("KERNEL_OK")
</pallas_src>

<mosaic_0001>
module attributes {stable_mosaic.version = 11 : i64} {
  func.func @_encoder_kernel(%arg0: i32, %arg1: memref<1x4x256xf32, #tpu.memory_space<vmem>>, %arg2: memref<8x36xbf16, #tpu.memory_space<vmem>>, %arg3: memref<8x1xf32, #tpu.memory_space<vmem>>, %arg4: memref<8x72xbf16, #tpu.memory_space<vmem>>, %arg5: memref<8x1xf32, #tpu.memory_space<vmem>>, %arg6: memref<2x256xf32, #tpu.memory_space<vmem>>, %arg7: memref<15x8xf32, #tpu.memory_space<vmem>>, %arg8: memref<16x72xbf16, #tpu.memory_space<vmem>>, %arg9: memref<16x1xf32, #tpu.memory_space<vmem>>, %arg10: memref<16x144xbf16, #tpu.memory_space<vmem>>, %arg11: memref<16x1xf32, #tpu.memory_space<vmem>>, %arg12: memref<2x64xf32, #tpu.memory_space<vmem>>, %arg13: memref<7x4xf32, #tpu.memory_space<vmem>>, %arg14: memref<1x16x16xf32, #tpu.memory_space<vmem>>, %arg15: memref<1x8x256xf32, #tpu.memory_space<vmem>>, %arg16: memref<1x16x64xf32, #tpu.memory_space<vmem>>, %arg17: memref<16x290xf32, #tpu.memory_space<vmem>>, %arg18: memref<144x256xbf16, #tpu.memory_space<vmem>>) attributes {dimension_semantics = [#tpu.dimension_semantics<parallel>], iteration_bounds = array<i64: 2>, scalar_prefetch = 0 : i64, scratch_operands = 2 : i64, tpu.core_type = #tpu.core_type<tc>, window_params = [{transform_indices = @transform_0, window_bounds = array<i64: 1, 4, 256>}, {pipeline_mode = #tpu.pipeline_mode<synchronous>, transform_indices = @transform_1, window_bounds = array<i64: 8, 36>}, {pipeline_mode = #tpu.pipeline_mode<synchronous>, transform_indices = @transform_2, window_bounds = array<i64: 8, 1>}, {pipeline_mode = #tpu.pipeline_mode<synchronous>, transform_indices = @transform_3, window_bounds = array<i64: 8, 72>}, {pipeline_mode = #tpu.pipeline_mode<synchronous>, transform_indices = @transform_4, window_bounds = array<i64: 8, 1>}, {pipeline_mode = #tpu.pipeline_mode<synchronous>, transform_indices = @transform_5, window_bounds = array<i64: 2, 256>}, {pipeline_mode = #tpu.pipeline_mode<synchronous>, transform_indices = @transform_6, window_bounds = array<i64: 15, 8>}, {pipeline_mode = #tpu.pipeline_mode<synchronous>, transform_indices = @transform_7, window_bounds = array<i64: 16, 72>}, {pipeline_mode = #tpu.pipeline_mode<synchronous>, transform_indices = @transform_8, window_bounds = array<i64: 16, 1>}, {pipeline_mode = #tpu.pipeline_mode<synchronous>, transform_indices = @transform_9, window_bounds = array<i64: 16, 144>}, {pipeline_mode = #tpu.pipeline_mode<synchronous>, transform_indices = @transform_10, window_bounds = array<i64: 16, 1>}, {pipeline_mode = #tpu.pipeline_mode<synchronous>, transform_indices = @transform_11, window_bounds = array<i64: 2, 64>}, {pipeline_mode = #tpu.pipeline_mode<synchronous>, transform_indices = @transform_12, window_bounds = array<i64: 7, 4>}, {transform_indices = @transform_13, window_bounds = array<i64: 1, 16, 16>}, {transform_indices = @transform_14, window_bounds = array<i64: 1, 8, 256>}, {transform_indices = @transform_15, window_bounds = array<i64: 1, 16, 64>}]} {
    %cst = arith.constant 0.000000e+00 : f32
    %0 = vector.broadcast %cst : f32 to vector<16x290xf32>
    %c0 = arith.constant 0 : index
    %c0_0 = arith.constant 0 : index
    %1 = vector.load %arg17[%c0, %c0_0] : memref<16x290xf32, #tpu.memory_space<vmem>>, vector<16x290xf32>
    tpu.vector_store %arg17[%c0, %c0_0], %0 {strides = array<i32>} : memref<16x290xf32, #tpu.memory_space<vmem>>, vector<16x290xf32>,
    %c0_1 = arith.constant 0 : index
    %c0_2 = arith.constant 0 : index
    %c0_3 = arith.constant 0 : index
    %2 = vector.load %arg1[%c0_1, %c0_2, %c0_3] : memref<1x4x256xf32, #tpu.memory_space<vmem>>, vector<1x4x256xf32>
    %3 = vector.shape_cast %2 : vector<1x4x256xf32> to vector<4x256xf32>
    %c0_4 = arith.constant 0 : index
    %c17 = arith.constant 17 : index
    %4 = vector.load %arg17[%c0_4, %c17] : memref<16x290xf32, #tpu.memory_space<vmem>>, vector<4x256xf32>
    tpu.vector_store %arg17[%c0_4, %c17], %3 {strides = array<i32>} : memref<16x290xf32, #tpu.memory_space<vmem>>, vector<4x256xf32>,
    %c0_5 = arith.constant 0 : index
    %c0_6 = arith.constant 0 : index
    %5 = vector.load %arg17[%c0_5, %c0_6] : memref<16x290xf32, #tpu.memory_space<vmem>>, vector<4x290xf32>
    %6 = vector.extract_strided_slice %5 {offsets = [0, 0], sizes = [4, 256], strides = [1, 1]} : vector<4x290xf32> to vector<4x256xf32>
    %c0_7 = arith.constant 0 : index
    %c0_8 = arith.constant 0 : index
    %7 = vector.load %arg6[%c0_7, %c0_8] : memref<2x256xf32, #tpu.memory_space<vmem>>, vector<1x256xf32>
    %8 = vector.broadcast %7 : vector<1x256xf32> to vector<4x256xf32>
    %9 = arith.mulf %6, %8 : vector<4x256xf32>
    %10 = arith.truncf %9 : vector<4x256xf32> to vector<4x256xbf16>
    %c0_9 = arith.constant 0 : index
    %c0_10 = arith.constant 0 : index
    %11 = vector.load %arg18[%c0_9, %c0_10] : memref<144x256xbf16, #tpu.memory_space<vmem>>, vector<4x256xbf16>
    tpu.vector_store %arg18[%c0_9, %c0_10], %10 {strides = array<i32>} : memref<144x256xbf16, #tpu.memory_space<vmem>>, vector<4x256xbf16>,
    %12 = vector.extract_strided_slice %5 {offsets = [0, 1], sizes = [4, 256], strides = [1, 1]} : vector<4x290xf32> to vector<4x256xf32>
    %13 = arith.truncf %12 : vector<4x256xf32> to vector<4x256xbf16>
    %c4 = arith.constant 4 : index
    %c0_11 = arith.constant 0 : index
    %14 = vector.load %arg18[%c4, %c0_11] : memref<144x256xbf16, #tpu.memory_space<vmem>>, vector<4x256xbf16>
    tpu.vector_store %arg18[%c4, %c0_11], %13 {strides = array<i32>} : memref<144x256xbf16, #tpu.memory_space<vmem>>, vector<4x256xbf16>,
    %15 = vector.extract_strided_slice %5 {offsets = [0, 2], sizes = [4, 256], strides = [1, 1]} : vector<4x290xf32> to vector<4x256xf32>
    %c1 = arith.constant 1 : index
    %c0_12 = arith.constant 0 : index
    %16 = vector.load %arg6[%c1, %c0_12] : memref<2x256xf32, #tpu.memory_space<vmem>>, vector<1x256xf32>
    %17 = vector.broadcast %16 : vector<1x256xf32> to vector<4x256xf32>
    %18 = arith.mulf %15, %17 : vector<4x256xf32>
    %19 = arith.truncf %18 : vector<4x256xf32> to vector<4x256xbf16>
    %c8 = arith.constant 8 : index
    %c0_13 = arith.constant 0 : index
    %20 = vector.load %arg18[%c8, %c0_13] : memref<144x256xbf16, #tpu.memory_space<vmem>>, vector<4x256xbf16>
    tpu.vector_store %arg18[%c8, %c0_13], %19 {strides = array<i32>} : memref<144x256xbf16, #tpu.memory_space<vmem>>, vector<4x256xbf16>,
    %21 = vector.extract_strided_slice %5 {offsets = [0, 16], sizes = [4, 256], strides = [1, 1]} : vector<4x290xf32> to vector<4x256xf32>
    %c0_14 = arith.constant 0 : index
    %c0_15 = arith.constant 0 : index
    %22 = vector.load %arg6[%c0_14, %c0_15] : memref<2x256xf32, #tpu.memory_space<vmem>>, vector<1x256xf32>
    %23 = vector.broadcast %22 : vector<1x256xf32> to vector<4x256xf32>
    %24 = arith.mulf %21, %23 : vector<4x256xf32>
    %25 = arith.truncf %24 : vector<4x256xf32> to vector<4x256xbf16>
    %c12 = arith.constant 12 : index
    %c0_16 = arith.constant 0 : index
    %26 = vector.load %arg18[%c12, %c0_16] : memref<144x256xbf16, #tpu.memory_space<vmem>>, vector<4x256xbf16>
    tpu.vector_store %arg18[%c12, %c0_16], %25 {strides = array<i32>} : memref<144x256xbf16, #tpu.memory_space<vmem>>, vector<4x256xbf16>,
    %27 = vector.extract_strided_slice %5 {offsets = [0, 17], sizes = [4, 256], strides = [1, 1]} : vector<4x290xf32> to vector<4x256xf32>
    %28 = arith.truncf %27 : vector<4x256xf32> to vector<4x256xbf16>
    %c16 = arith.constant 16 : index
    %c0_17 = arith.constant 0 : index
    %29 = vector.load %arg18[%c16, %c0_17] : memref<144x256xbf16, #tpu.memory_space<vmem>>, vector<4x256xbf16>
    tpu.vector_store %arg18[%c16, %c0_17], %28 {strides = array<i32>} : memref<144x256xbf16, #tpu.memory_space<vmem>>, vector<4x256xbf16>,
    %30 = vector.extract_strided_slice %5 {offsets = [0, 18], sizes = [4, 256], strides = [1, 1]} : vector<4x290xf32> to vector<4x256xf32>
    %c1_18 = arith.constant 1 : index
    %c0_19 = arith.constant 0 : index
    %31 = vector.load %arg6[%c1_18, %c0_19] : memref<2x256xf32, #tpu.memory_space<vmem>>, vector<1x256xf32>
    %32 = vector.broadcast %31 : vector<1x256xf32> to vector<4x256xf32>
    %33 = arith.mulf %30, %32 : vector<4x256xf32>
    %34 = arith.truncf %33 : vector<4x256xf32> to vector<4x256xbf16>
    %c20 = arith.constant 20 : index
    %c0_20 = arith.constant 0 : index
    %35 = vector.load %arg18[%c20, %c0_20] : memref<144x256xbf16, #tpu.memory_space<vmem>>, vector<4x256xbf16>
    tpu.vector_store %arg18[%c20, %c0_20], %34 {strides = array<i32>} : memref<144x256xbf16, #tpu.memory_space<vmem>>, vector<4x256xbf16>,
    %36 = vector.extract_strided_slice %5 {offsets = [0, 32], sizes = [4, 256], strides = [1, 1]} : vector<4x290xf32> to vector<4x256xf32>
    %c0_21 = arith.constant 0 : index
    %c0_22 = arith.constant 0 : index
    %37 = vector.load %arg6[%c0_21, %c0_22] : memref<2x256xf32, #tpu.memory_space<vmem>>, vector<1x256xf32>
    %38 = vector.broadcast %37 : vector<1x256xf32> to vector<4x256xf32>
    %39 = arith.mulf %36, %38 : vector<4x256xf32>
    %40 = arith.truncf %39 : vector<4x256xf32> to vector<4x256xbf16>
    %c24 = arith.constant 24 : index
    %c0_23 = arith.constant 0 : index
    %41 = vector.load %arg18[%c24, %c0_23] : memref<144x256xbf16, #tpu.memory_space<vmem>>, vector<4x256xbf16>
    tpu.vector_store %arg18[%c24, %c0_23], %40 {strides = array<i32>} : memref<144x256xbf16, #tpu.memory_space<vmem>>, vector<4x256xbf16>,
    %42 = vector.extract_strided_slice %5 {offsets = [0, 33], sizes = [4, 256], strides = [1, 1]} : vector<4x290xf32> to vector<4x256xf32>
    %43 = arith.truncf %42 : vector<4x256xf32> to vector<4x256xbf16>
    %c28 = arith.constant 28 : index
    %c0_24 = arith.constant 0 : index
    %44 = vector.load %arg18[%c28, %c0_24] : memref<144x256xbf16, #tpu.memory_space<vmem>>, vector<4x256xbf16>
    tpu.vector_store %arg18[%c28, %c0_24], %43 {strides = array<i32>} : memref<144x256xbf16, #tpu.memory_space<vmem>>, vector<4x256xbf16>,
    %45 = vector.extract_strided_slice %5 {offsets = [0, 34], sizes = [4, 256], strides = [1, 1]} : vector<4x290xf32> to vector<4x256xf32>
    %c1_25 = arith.constant 1 : index
    %c0_26 = arith.constant 0 : index
    %46 = vector.load %arg6[%c1_25, %c0_26] : memref<2x256xf32, #tpu.memory_space<vmem>>, vector<1x256xf32>
    %47 = vector.broadcast %46 : vector<1x256xf32> to vector<4x256xf32>
    %48 = arith.mulf %45, %47 : vector<4x256xf32>
    %49 = arith.truncf %48 : vector<4x256xf32> to vector<4x256xbf16>
    %c32 = arith.constant 32 : index
    %c0_27 = arith.constant 0 : index
    %50 = vector.load %arg18[%c32, %c0_27] : memref<144x256xbf16, #tpu.memory_space<vmem>>, vector<4x256xbf16>
    tpu.vector_store %arg18[%c32, %c0_27], %49 {strides = array<i32>} : memref<144x256xbf16, #tpu.memory_space<vmem>>, vector<4x256xbf16>,
    %c0_28 = arith.constant 0 : index
    %c0_29 = arith.constant 0 : index
    %51 = vector.load %arg2[%c0_28, %c0_29] : memref<8x36xbf16, #tpu.memory_space<vmem>>, vector<8x36xbf16>
    %c0_30 = arith.constant 0 : index
    %c0_31 = arith.constant 0 : index
    %52 = vector.load %arg18[%c0_30, %c0_31] : memref<144x256xbf16, #tpu.memory_space<vmem>>, vector<36x256xbf16>
    %cst_32 = arith.constant dense<0.000000e+00> : vector<8x256xf32>
    %53 = tpu.matmul %51, %52, %cst_32 {dimension_numbers = #tpu.dot_dimension_numbers<[1], [0], [0], [1], [0, 0, 1, 1], [], []>} : vector<8x36xbf16>, vector<36x256xbf16>, vector<8x256xf32> -> vector<8x256xf32>
    %c0_33 = arith.constant 0 : index
    %c0_34 = arith.constant 0 : index
    %54 = vector.load %arg3[%c0_33, %c0_34] : memref<8x1xf32, #tpu.memory_space<vmem>>, vector<8x1xf32>
    %55 = vector.broadcast %54 : vector<8x1xf32> to vector<8x256xf32>
    %56 = arith.addf %53, %55 : vector<8x256xf32>
    %cst_35 = arith.constant 0.000000e+00 : f32
    %57 = vector.broadcast %cst_35 : f32 to vector<8x256xf32>
    %58 = arith.maximumf %56, %57 : vector<8x256xf32>
    %c0_36 = arith.constant 0 : index
    %c17_37 = arith.constant 17 : index
    %59 = vector.load %arg17[%c0_36, %c17_37] : memref<16x290xf32, #tpu.memory_space<vmem>>, vector<8x256xf32>
    tpu.vector_store %arg17[%c0_36, %c17_37], %58 {strides = array<i32>} : memref<16x290xf32, #tpu.memory_space<vmem>>, vector<8x256xf32>,
    %c0_38 = arith.constant 0 : index
    %c0_39 = arith.constant 0 : index
    %60 = vector.load %arg17[%c0_38, %c0_39] : memref<16x290xf32, #tpu.memory_space<vmem>>, vector<8x290xf32>
    %61 = vector.extract_strided_slice %60 {offsets = [0, 0], sizes = [8, 256], strides = [1, 1]} : vector<8x290xf32> to vector<8x256xf32>
    %c0_40 = arith.constant 0 : index
    %c0_41 = arith.constant 0 : index
    %62 = vector.load %arg6[%c0_40, %c0_41] : memref<2x256xf32, #tpu.memory_space<vmem>>, vector<1x256xf32>
    %63 = vector.broadcast %62 : vector<1x256xf32> to vector<8x256xf32>
    %64 = arith.mulf %61, %63 : vector<8x256xf32>
    %65 = arith.truncf %64 : vector<8x256xf32> to vector<8x256xbf16>
    %c0_42 = arith.constant 0 : index
    %c0_43 = arith.constant 0 : index
    %66 = vector.load %arg18[%c0_42, %c0_43] : memref<144x256xbf16, #tpu.memory_space<vmem>>, vector<8x256xbf16>
    tpu.vector_store %arg18[%c0_42, %c0_43], %65 {strides = array<i32>} : memref<144x256xbf16, #tpu.memory_space<vmem>>, vector<8x256xbf16>,
    %67 = vector.extract_strided_slice %60 {offsets = [0, 1], sizes = [8, 256], strides = [1, 1]} : vector<8x290xf32> to vector<8x256xf32>
    %68 = arith.truncf %67 : vector<8x256xf32> to vector<8x256xbf16>
    %c8_44 = arith.constant 8 : index
    %c0_45 = arith.constant 0 : index
    %69 = vector.load %arg18[%c8_44, %c0_45] : memref<144x256xbf16, #tpu.memory_space<vmem>>, vector<8x256xbf16>
    tpu.vector_store %arg18[%c8_44, %c0_45], %68 {strides = array<i32>} : memref<144x256xbf16, #tpu.memory_space<vmem>>, vector<8x256xbf16>,
    %70 = vector.extract_strided_slice %60 {offsets = [0, 2], sizes = [8, 256], strides = [1, 1]} : vector<8x290xf32> to vector<8x256xf32>
    %c1_46 = arith.constant 1 : index
    %c0_47 = arith.constant 0 : index
    %71 = vector.load %arg6[%c1_46, %c0_47] : memref<2x256xf32, #tpu.memory_space<vmem>>, vector<1x256xf32>
    %72 = vector.broadcast %71 : vector<1x256xf32> to vector<8x256xf32>
    %73 = arith.mulf %70, %72 : vector<8x256xf32>
    %74 = arith.truncf %73 : vector<8x256xf32> to vector<8x256xbf16>
    %c16_48 = arith.constant 16 : index
    %c0_49 = arith.constant 0 : index
    %75 = vector.load %arg18[%c16_48, %c0_49] : memref<144x256xbf16, #tpu.memory_space<vmem>>, vector<8x256xbf16>
    tpu.vector_store %arg18[%c16_48, %c0_49], %74 {strides = array<i32>} : memref<144x256xbf16, #tpu.memory_space<vmem>>, vector<8x256xbf16>,
    %76 = vector.extract_strided_slice %60 {offsets = [0, 16], sizes = [8, 256], strides = [1, 1]} : vector<8x290xf32> to vector<8x256xf32>
    %c0_50 = arith.constant 0 : index
    %c0_51 = arith.constant 0 : index
    %77 = vector.load %arg6[%c0_50, %c0_51] : memref<2x256xf32, #tpu.memory_space<vmem>>, vector<1x256xf32>
    %78 = vector.broadcast %77 : vector<1x256xf32> to vector<8x256xf32>
    %79 = arith.mulf %76, %78 : vector<8x256xf32>
    %80 = arith.truncf %79 : vector<8x256xf32> to vector<8x256xbf16>
    %c24_52 = arith.constant 24 : index
    %c0_53 = arith.constant 0 : index
    %81 = vector.load %arg18[%c24_52, %c0_53] : memref<144x256xbf16, #tpu.memory_space<vmem>>, vector<8x256xbf16>
    tpu.vector_store %arg18[%c24_52, %c0_53], %80 {strides = array<i32>} : memref<144x256xbf16, #tpu.memory_space<vmem>>, vector<8x256xbf16>,
    %82 = vector.extract_strided_slice %60 {offsets = [0, 17], sizes = [8, 256], strides = [1, 1]} : vector<8x290xf32> to vector<8x256xf32>
    %83 = arith.truncf %82 : vector<8x256xf32> to vector<8x256xbf16>
    %c32_54 = arith.constant 32 : index
    %c0_55 = arith.constant 0 : index
    %84 = vector.load %arg18[%c32_54, %c0_55] : memref<144x256xbf16, #tpu.memory_space<vmem>>, vector<8x256xbf16>
    tpu.vector_store %arg18[%c32_54, %c0_55], %83 {strides = array<i32>} : memref<144x256xbf16, #tpu.memory_space<vmem>>, vector<8x256xbf16>,
    %85 = vector.extract_strided_slice %60 {offsets = [0, 18], sizes = [8, 256], strides = [1, 1]} : vector<8x290xf32> to vector<8x256xf32>
    %c1_56 = arith.constant 1 : index
    %c0_57 = arith.constant 0 : index
    %86 = vector.load %arg6[%c1_56, %c0_57] : memref<2x256xf32, #tpu.memory_space<vmem>>, vector<1x256xf32>
    %87 = vector.broadcast %86 : vector<1x256xf32> to vector<8x256xf32>
    %88 = arith.mulf %85, %87 : vector<8x256xf32>
    %89 = arith.truncf %88 : vector<8x256xf32> to vector<8x256xbf16>
    %c40 = arith.constant 40 : index
    %c0_58 = arith.constant 0 : index
    %90 = vector.load %arg18[%c40, %c0_58] : memref<144x256xbf16, #tpu.memory_space<vmem>>, vector<8x256xbf16>
    tpu.vector_store %arg18[%c40, %c0_58], %89 {strides = array<i32>} : memref<144x256xbf16, #tpu.memory_space<vmem>>, vector<8x256xbf16>,
    %91 = vector.extract_strided_slice %60 {offsets = [0, 32], sizes = [8, 256], strides = [1, 1]} : vector<8x290xf32> to vector<8x256xf32>
    %c0_59 = arith.constant 0 : index
    %c0_60 = arith.constant 0 : index
    %92 = vector.load %arg6[%c0_59, %c0_60] : memref<2x256xf32, #tpu.memory_space<vmem>>, vector<1x256xf32>
    %93 = vector.broadcast %92 : vector<1x256xf32> to vector<8x256xf32>
    %94 = arith.mulf %91, %93 : vector<8x256xf32>
    %95 = arith.truncf %94 : vector<8x256xf32> to vector<8x256xbf16>
    %c48 = arith.constant 48 : index
    %c0_61 = arith.constant 0 : index
    %96 = vector.load %arg18[%c48, %c0_61] : memref<144x256xbf16, #tpu.memory_space<vmem>>, vector<8x256xbf16>
    tpu.vector_store %arg18[%c48, %c0_61], %95 {strides = array<i32>} : memref<144x256xbf16, #tpu.memory_space<vmem>>, vector<8x256xbf16>,
    %97 = vector.extract_strided_slice %60 {offsets = [0, 33], sizes = [8, 256], strides = [1, 1]} : vector<8x290xf32> to vector<8x256xf32>
    %98 = arith.truncf %97 : vector<8x256xf32> to vector<8x256xbf16>
    %c56 = arith.constant 56 : index
    %c0_62 = arith.constant 0 : index
    %99 = vector.load %arg18[%c56, %c0_62] : memref<144x256xbf16, #tpu.memory_space<vmem>>, vector<8x256xbf16>
    tpu.vector_store %arg18[%c56, %c0_62], %98 {strides = array<i32>} : memref<144x256xbf16, #tpu.memory_space<vmem>>, vector<8x256xbf16>,
    %100 = vector.extract_strided_slice %60 {offsets = [0, 34], sizes = [8, 256], strides = [1, 1]} : vector<8x290xf32> to vector<8x256xf32>
    %c1_63 = arith.constant 1 : index
    %c0_64 = arith.constant 0 : index
    %101 = vector.load %arg6[%c1_63, %c0_64] : memref<2x256xf32, #tpu.memory_space<vmem>>, vector<1x256xf32>
    %102 = vector.broadcast %101 : vector<1x256xf32> to vector<8x256xf32>
    %103 = arith.mulf %100, %102 : vector<8x256xf32>
    %104 = arith.truncf %103 : vector<8x256xf32> to vector<8x256xbf16>
    %c64 = arith.constant 64 : index
    %c0_65 = arith.constant 0 : index
    %105 = vector.load %arg18[%c64, %c0_65] : memref<144x256xbf16, #tpu.memory_space<vmem>>, vector<8x256xbf16>
    tpu.vector_store %arg18[%c64, %c0_65], %104 {strides = array<i32>} : memref<144x256xbf16, #tpu.memory_space<vmem>>, vector<8x256xbf16>,
    %c0_66 = arith.constant 0 : index
    %c0_67 = arith.constant 0 : index
    %106 = vector.load %arg4[%c0_66, %c0_67] : memref<8x72xbf16, #tpu.memory_space<vmem>>, vector<8x72xbf16>
    %c0_68 = arith.constant 0 : index
    %c0_69 = arith.constant 0 : index
    %107 = vector.load %arg18[%c0_68, %c0_69] : memref<144x256xbf16, #tpu.memory_space<vmem>>, vector<72x256xbf16>
    %cst_70 = arith.constant dense<0.000000e+00> : vector<8x256xf32>
    %108 = tpu.matmul %106, %107, %cst_70 {dimension_numbers = #tpu.dot_dimension_numbers<[1], [0], [0], [1], [0, 0, 1, 1], [], []>} : vector<8x72xbf16>, vector<72x256xbf16>, vector<8x256xf32> -> vector<8x256xf32>
    %c0_71 = arith.constant 0 : index
    %c0_72 = arith.constant 0 : index
    %109 = vector.load %arg5[%c0_71, %c0_72] : memref<8x1xf32, #tpu.memory_space<vmem>>, vector<8x1xf32>
    %110 = vector.broadcast %109 : vector<8x1xf32> to vector<8x256xf32>
    %111 = arith.addf %108, %110 : vector<8x256xf32>
    %cst_73 = arith.constant 0.000000e+00 : f32
    %112 = vector.broadcast %cst_73 : f32 to vector<8x256xf32>
    %113 = arith.maximumf %111, %112 : vector<8x256xf32>
    %c0_74 = arith.constant 0 : index
    %c0_75 = arith.constant 0 : index
    %c0_76 = arith.constant 0 : index
    %114 = vector.load %arg15[%c0_74, %c0_75, %c0_76] : memref<1x8x256xf32, #tpu.memory_space<vmem>>, vector<1x8x256xf32>
    %115 = vector.shape_cast %114 : vector<1x8x256xf32> to vector<8x256xf32>
    %116 = vector.shape_cast %113 : vector<8x256xf32> to vector<1x8x256xf32>
    tpu.vector_store %arg15[%c0_74, %c0_75, %c0_76], %116 {strides = array<i32>} : memref<1x8x256xf32, #tpu.memory_space<vmem>>, vector<1x8x256xf32>,
    %117 = vector.extract_strided_slice %113 {offsets = [0, 0], sizes = [8, 240], strides = [1, 1]} : vector<8x256xf32> to vector<8x240xf32>
    %118 = vector.extract_strided_slice %113 {offsets = [0, 16], sizes = [8, 240], strides = [1, 1]} : vector<8x256xf32> to vector<8x240xf32>
    %119 = arith.maximumf %117, %118 : vector<8x240xf32>
    %120 = vector.extract_strided_slice %119 {offsets = [0, 0], sizes = [8, 16], strides = [1, 1]} : vector<8x240xf32> to vector<8x16xf32>
    %121 = vector.extract_strided_slice %120 {offsets = [0, 0], sizes = [8, 15], strides = [1, 1]} : vector<8x16xf32> to vector<8x15xf32>
    %122 = vector.extract_strided_slice %120 {offsets = [0, 1], sizes = [8, 15], strides = [1, 1]} : vector<8x16xf32> to vector<8x15xf32>
    %123 = arith.maximumf %121, %122 : vector<8x15xf32>
    %c0_77 = arith.constant 0 : index
    %c0_78 = arith.constant 0 : index
    %124 = vector.load %arg7[%c0_77, %c0_78] : memref<15x8xf32, #tpu.memory_space<vmem>>, vector<15x8xf32>
    %cst_79 = arith.constant dense<0.000000e+00> : vector<8x8xf32>
    %125 = tpu.matmul %123, %124, %cst_79 {dimension_numbers = #tpu.dot_dimension_numbers<[1], [0], [0], [1], [0, 0, 1, 1], [], []>} : vector<8x15xf32>, vector<15x8xf32>, vector<8x8xf32> -> vector<8x8xf32>
    %c0_80 = arith.constant 0 : index
    %c9 = arith.constant 9 : index
    %126 = vector.load %arg17[%c0_80, %c9] : memref<16x290xf32, #tpu.memory_space<vmem>>, vector<8x8xf32>
    tpu.vector_store %arg17[%c0_80, %c9], %125 {strides = array<i32>} : memref<16x290xf32, #tpu.memory_space<vmem>>, vector<8x8xf32>,
    %127 = vector.extract_strided_slice %119 {offsets = [0, 32], sizes = [8, 16], strides = [1, 1]} : vector<8x240xf32> to vector<8x16xf32>
    %128 = vector.extract_strided_slice %127 {offsets = [0, 0], sizes = [8, 15], strides = [1, 1]} : vector<8x16xf32> to vector<8x15xf32>
    %129 = vector.extract_strided_slice %127 {offsets = [0, 1], sizes = [8, 15], strides = [1, 1]} : vector<8x16xf32> to vector<8x15xf32>
    %130 = arith.maximumf %128, %129 : vector<8x15xf32>
    %c0_81 = arith.constant 0 : index
    %c0_82 = arith.constant 0 : index
    %131 = vector.load %arg7[%c0_81, %c0_82] : memref<15x8xf32, #tpu.memory_space<vmem>>, vector<15x8xf32>
    %cst_83 = arith.constant dense<0.000000e+00> : vector<8x8xf32>
    %132 = tpu.matmul %130, %131, %cst_83 {dimension_numbers = #tpu.dot_dimension_numbers<[1], [0], [0], [1], [0, 0, 1, 1], [], []>} : vector<8x15xf32>, vector<15x8xf32>, vector<8x8xf32> -> vector<8x8xf32>
    %c0_84 = arith.constant 0 : index
    %c17_85 = arith.constant 17 : index
    %133 = vector.load %arg17[%c0_84, %c17_85] : memref<16x290xf32, #tpu.memory_space<vmem>>, vector<8x8xf32>
    tpu.vector_store %arg17[%c0_84, %c17_85], %132 {strides = array<i32>} : memref<16x290xf32, #tpu.memory_space<vmem>>, vector<8x8xf32>,
    %134 = vector.extract_strided_slice %119 {offsets = [0, 64], sizes = [8, 16], strides = [1, 1]} : vector<8x240xf32> to vector<8x16xf32>
    %135 = vector.extract_strided_slice %134 {offsets = [0, 0], sizes = [8, 15], strides = [1, 1]} : vector<8x16xf32> to vector<8x15xf32>
    %136 = vector.extract_strided_slice %134 {offsets = [0, 1], sizes = [8, 15], strides = [1, 1]} : vector<8x16xf32> to vector<8x15xf32>
    %137 = arith.maximumf %135, %136 : vector<8x15xf32>
    %c0_86 = arith.constant 0 : index
    %c0_87 = arith.constant 0 : index
    %138 = vector.load %arg7[%c0_86, %c0_87] : memref<15x8xf32, #tpu.memory_space<vmem>>, vector<15x8xf32>
    %cst_88 = arith.constant dense<0.000000e+00> : vector<8x8xf32>
    %139 = tpu.matmul %137, %138, %cst_88 {dimension_numbers = #tpu.dot_dimension_numbers<[1], [0], [0], [1], [0, 0, 1, 1], [], []>} : vector<8x15xf32>, vector<15x8xf32>, vector<8x8xf32> -> vector<8x8xf32>
    %c0_89 = arith.constant 0 : index
    %c25 = arith.constant 25 : index
    %140 = vector.load %arg17[%c0_89, %c25] : memref<16x290xf32, #tpu.memory_space<vmem>>, vector<8x8xf32>
    tpu.vector_store %arg17[%c0_89, %c25], %139 {strides = array<i32>} : memref<16x290xf32, #tpu.memory_space<vmem>>, vector<8x8xf32>,
    %141 = vector.extract_strided_slice %119 {offsets = [0, 96], sizes = [8, 16], strides = [1, 1]} : vector<8x240xf32> to vector<8x16xf32>
    %142 = vector.extract_strided_slice %141 {offsets = [0, 0], sizes = [8, 15], strides = [1, 1]} : vector<8x16xf32> to vector<8x15xf32>
    %143 = vector.extract_strided_slice %141 {offsets = [0, 1], sizes = [8, 15], strides = [1, 1]} : vector<8x16xf32> to vector<8x15xf32>
    %144 = arith.maximumf %142, %143 : vector<8x15xf32>
    %c0_90 = arith.constant 0 : index
    %c0_91 = arith.constant 0 : index
    %145 = vector.load %arg7[%c0_90, %c0_91] : memref<15x8xf32, #tpu.memory_space<vmem>>, vector<15x8xf32>
    %cst_92 = arith.constant dense<0.000000e+00> : vector<8x8xf32>
    %146 = tpu.matmul %144, %145, %cst_92 {dimension_numbers = #tpu.dot_dimension_numbers<[1], [0], [0], [1], [0, 0, 1, 1], [], []>} : vector<8x15xf32>, vector<15x8xf32>, vector<8x8xf32> -> vector<8x8xf32>
    %c0_93 = arith.constant 0 : index
    %c33 = arith.constant 33 : index
    %147 = vector.load %arg17[%c0_93, %c33] : memref<16x290xf32, #tpu.memory_space<vmem>>, vector<8x8xf32>
    tpu.vector_store %arg17[%c0_93, %c33], %146 {strides = array<i32>} : memref<16x290xf32, #tpu.memory_space<vmem>>, vector<8x8xf32>,
    %148 = vector.extract_strided_slice %119 {offsets = [0, 128], sizes = [8, 16], strides = [1, 1]} : vector<8x240xf32> to vector<8x16xf32>
    %149 = vector.extract_strided_slice %148 {offsets = [0, 0], sizes = [8, 15], strides = [1, 1]} : vector<8x16xf32> to vector<8x15xf32>
    %150 = vector.extract_strided_slice %148 {offsets = [0, 1], sizes = [8, 15], strides = [1, 1]} : vector<8x16xf32> to vector<8x15xf32>
    %151 = arith.maximumf %149, %150 : vector<8x15xf32>
    %c0_94 = arith.constant 0 : index
    %c0_95 = arith.constant 0 : index
    %152 = vector.load %arg7[%c0_94, %c0_95] : memref<15x8xf32, #tpu.memory_space<vmem>>, vector<15x8xf32>
    %cst_96 = arith.constant dense<0.000000e+00> : vector<8x8xf32>
    %153 = tpu.matmul %151, %152, %cst_96 {dimension_numbers = #tpu.dot_dimension_numbers<[1], [0], [0], [1], [0, 0, 1, 1], [], []>} : vector<8x15xf32>, vector<15x8xf32>, vector<8x8xf32> -> vector<8x8xf32>
    %c0_97 = arith.constant 0 : index
    %c41 = arith.constant 41 : index
    %154 = vector.load %arg17[%c0_97, %c41] : memref<16x290xf32, #tpu.memory_space<vmem>>, vector<8x8xf32>
    tpu.vector_store %arg17[%c0_97, %c41], %153 {strides = array<i32>} : memref<16x290xf32, #tpu.memory_space<vmem>>, vector<8x8xf32>,
    %155 = vector.extract_strided_slice %119 {offsets = [0, 160], sizes = [8, 16], strides = [1, 1]} : vector<8x240xf32> to vector<8x16xf32>
    %156 = vector.extract_strided_slice %155 {offsets = [0, 0], sizes = [8, 15], strides = [1, 1]} : vector<8x16xf32> to vector<8x15xf32>
    %157 = vector.extract_strided_slice %155 {offsets = [0, 1], sizes = [8, 15], strides = [1, 1]} : vector<8x16xf32> to vector<8x15xf32>
    %158 = arith.maximumf %156, %157 : vector<8x15xf32>
    %c0_98 = arith.constant 0 : index
    %c0_99 = arith.constant 0 : index
    %159 = vector.load %arg7[%c0_98, %c0_99] : memref<15x8xf32, #tpu.memory_space<vmem>>, vector<15x8xf32>
    %cst_100 = arith.constant dense<0.000000e+00> : vector<8x8xf32>
    %160 = tpu.matmul %158, %159, %cst_100 {dimension_numbers = #tpu.dot_dimension_numbers<[1], [0], [0], [1], [0, 0, 1, 1], [], []>} : vector<8x15xf32>, vector<15x8xf32>, vector<8x8xf32> -> vector<8x8xf32>
    %c0_101 = arith.constant 0 : index
    %c49 = arith.constant 49 : index
    %161 = vector.load %arg17[%c0_101, %c49] : memref<16x290xf32, #tpu.memory_space<vmem>>, vector<8x8xf32>
    tpu.vector_store %arg17[%c0_101, %c49], %160 {strides = array<i32>} : memref<16x290xf32, #tpu.memory_space<vmem>>, vector<8x8xf32>,
    %162 = vector.extract_strided_slice %119 {offsets = [0, 192], sizes = [8, 16], strides = [1, 1]} : vector<8x240xf32> to vector<8x16xf32>
    %163 = vector.extract_strided_slice %162 {offsets = [0, 0], sizes = [8, 15], strides = [1, 1]} : vector<8x16xf32> to vector<8x15xf32>
    %164 = vector.extract_strided_slice %162 {offsets = [0, 1], sizes = [8, 15], strides = [1, 1]} : vector<8x16xf32> to vector<8x15xf32>
    %165 = arith.maximumf %163, %164 : vector<8x15xf32>
    %c0_102 = arith.constant 0 : index
    %c0_103 = arith.constant 0 : index
    %166 = vector.load %arg7[%c0_102, %c0_103] : memref<15x8xf32, #tpu.memory_space<vmem>>, vector<15x8xf32>
    %cst_104 = arith.constant dense<0.000000e+00> : vector<8x8xf32>
    %167 = tpu.matmul %165, %166, %cst_104 {dimension_numbers = #tpu.dot_dimension_numbers<[1], [0], [0], [1], [0, 0, 1, 1], [], []>} : vector<8x15xf32>, vector<15x8xf32>, vector<8x8xf32> -> vector<8x8xf32>
    %c0_105 = arith.constant 0 : index
    %c57 = arith.constant 57 : index
    %168 = vector.load %arg17[%c0_105, %c57] : memref<16x290xf32, #tpu.memory_space<vmem>>, vector<8x8xf32>
    tpu.vector_store %arg17[%c0_105, %c57], %167 {strides = array<i32>} : memref<16x290xf32, #tpu.memory_space<vmem>>, vector<8x8xf32>,
    %169 = vector.extract_strided_slice %119 {offsets = [0, 224], sizes = [8, 16], strides = [1, 1]} : vector<8x240xf32> to vector<8x16xf32>
    %170 = vector.extract_strided_slice %169 {offsets = [0, 0], sizes = [8, 15], strides = [1, 1]} : vector<8x16xf32> to vector<8x15xf32>
    %171 = vector.extract_strided_slice %169 {offsets = [0, 1], sizes = [8, 15], strides = [1, 1]} : vector<8x16xf32> to vector<8x15xf32>
    %172 = arith.maximumf %170, %171 : vector<8x15xf32>
    %c0_106 = arith.constant 0 : index
    %c0_107 = arith.constant 0 : index
    %173 = vector.load %arg7[%c0_106, %c0_107] : memref<15x8xf32, #tpu.memory_space<vmem>>, vector<15x8xf32>
    %cst_108 = arith.constant dense<0.000000e+00> : vector<8x8xf32>
    %174 = tpu.matmul %172, %173, %cst_108 {dimension_numbers = #tpu.dot_dimension_numbers<[1], [0], [0], [1], [0, 0, 1, 1], [], []>} : vector<8x15xf32>, vector<15x8xf32>, vector<8x8xf32> -> vector<8x8xf32>
    %c0_109 = arith.constant 0 : index
    %c65 = arith.constant 65 : index
    %175 = vector.load %arg17[%c0_109, %c65] : memref<16x290xf32, #tpu.memory_space<vmem>>, vector<8x8xf32>
    tpu.vector_store %arg17[%c0_109, %c65], %174 {strides = array<i32>} : memref<16x290xf32, #tpu.memory_space<vmem>>, vector<8x8xf32>,
    %cst_110 = arith.constant 0.000000e+00 : f32
    %176 = vector.broadcast %cst_110 : f32 to vector<16x9xf32>
    %c0_111 = arith.constant 0 : index
    %c0_112 = arith.constant 0 : index
    %177 = vector.load %arg17[%c0_111, %c0_112] : memref<16x290xf32, #tpu.memory_space<vmem>>, vector<16x9xf32>
    tpu.vector_store %arg17[%c0_111, %c0_112], %176 {strides = array<i32>} : memref<16x290xf32, #tpu.memory_space<vmem>>, vector<16x9xf32>,
    %cst_113 = arith.constant 0.000000e+00 : f32
    %178 = vector.broadcast %cst_113 : f32 to vector<16x9xf32>
    %c0_114 = arith.constant 0 : index
    %c73 = arith.constant 73 : index
    %179 = vector.load %arg17[%c0_114, %c73] : memref<16x290xf32, #tpu.memory_space<vmem>>, vector<16x9xf32>
    tpu.vector_store %arg17[%c0_114, %c73], %178 {strides = array<i32>} : memref<16x290xf32, #tpu.memory_space<vmem>>, vector<16x9xf32>,
    %c0_115 = arith.constant 0 : index
    %c0_116 = arith.constant 0 : index
    %180 = vector.load %arg17[%c0_115, %c0_116] : memref<16x290xf32, #tpu.memory_space<vmem>>, vector<8x82xf32>
    %181 = vector.extract_strided_slice %180 {offsets = [0, 0], sizes = [8, 64], strides = [1, 1]} : vector<8x82xf32> to vector<8x64xf32>
    %c0_117 = arith.constant 0 : index
    %c0_118 = arith.constant 0 : index
    %182 = vector.load %arg12[%c0_117, %c0_118] : memref<2x64xf32, #tpu.memory_space<vmem>>, vector<1x64xf32>
    %183 = vector.broadcast %182 : vector<1x64xf32> to vector<8x64xf32>
    %184 = arith.mulf %181, %183 : vector<8x64xf32>
    %185 = arith.truncf %184 : vector<8x64xf32> to vector<8x64xbf16>
    %c0_119 = arith.constant 0 : index
    %c0_120 = arith.constant 0 : index
    %186 = vector.load %arg18[%c0_119, %c0_120] : memref<144x256xbf16, #tpu.memory_space<vmem>>, vector<8x64xbf16>
    tpu.vector_store %arg18[%c0_119, %c0_120], %185 {strides = array<i32>} : memref<144x256xbf16, #tpu.memory_space<vmem>>, vector<8x64xbf16>,
    %187 = vector.extract_strided_slice %180 {offsets = [0, 1], sizes = [8, 64], strides = [1, 1]} : vector<8x82xf32> to vector<8x64xf32>
    %188 = arith.truncf %187 : vector<8x64xf32> to vector<8x64xbf16>
    %c8_121 = arith.constant 8 : index
    %c0_122 = arith.constant 0 : index
    %189 = vector.load %arg18[%c8_121, %c0_122] : memref<144x256xbf16, #tpu.memory_space<vmem>>, vector<8x64xbf16>
    tpu.vector_store %arg18[%c8_121, %c0_122], %188 {strides = array<i32>} : memref<144x256xbf16, #tpu.memory_space<vmem>>, vector<8x64xbf16>,
    %190 = vector.extract_strided_slice %180 {offsets = [0, 2], sizes = [8, 64], strides = [1, 1]} : vector<8x82xf32> to vector<8x64xf32>
    %c1_123 = arith.constant 1 : index
    %c0_124 = arith.constant 0 : index
    %191 = vector.load %arg12[%c1_123, %c0_124] : memref<2x64xf32, #tpu.memory_space<vmem>>, vector<1x64xf32>
    %192 = vector.broadcast %191 : vector<1x64xf32> to vector<8x64xf32>
    %193 = arith.mulf %190, %192 : vector<8x64xf32>
    %194 = arith.truncf %193 : vector<8x64xf32> to vector<8x64xbf16>
    %c16_125 = arith.constant 16 : index
    %c0_126 = arith.constant 0 : index
    %195 = vector.load %arg18[%c16_125, %c0_126] : memref<144x256xbf16, #tpu.memory_space<vmem>>, vector<8x64xbf16>
    tpu.vector_store %arg18[%c16_125, %c0_126], %194 {strides = array<i32>} : memref<144x256xbf16, #tpu.memory_space<vmem>>, vector<8x64xbf16>,
    %196 = vector.extract_strided_slice %180 {offsets = [0, 8], sizes = [8, 64], strides = [1, 1]} : vector<8x82xf32> to vector<8x64xf32>
    %c0_127 = arith.constant 0 : index
    %c0_128 = arith.constant 0 : index
    %197 = vector.load %arg12[%c0_127, %c0_128] : memref<2x64xf32, #tpu.memory_space<vmem>>, vector<1x64xf32>
    %198 = vector.broadcast %197 : vector<1x64xf32> to vector<8x64xf32>
    %199 = arith.mulf %196, %198 : vector<8x64xf32>
    %200 = arith.truncf %199 : vector<8x64xf32> to vector<8x64xbf16>
    %c24_129 = arith.constant 24 : index
    %c0_130 = arith.constant 0 : index
    %201 = vector.load %arg18[%c24_129, %c0_130] : memref<144x256xbf16, #tpu.memory_space<vmem>>, vector<8x64xbf16>
    tpu.vector_store %arg18[%c24_129, %c0_130], %200 {strides = array<i32>} : memref<144x256xbf16, #tpu.memory_space<vmem>>, vector<8x64xbf16>,
    %202 = vector.extract_strided_slice %180 {offsets = [0, 9], sizes = [8, 64], strides = [1, 1]} : vector<8x82xf32> to vector<8x64xf32>
    %203 = arith.truncf %202 : vector<8x64xf32> to vector<8x64xbf16>
    %c32_131 = arith.constant 32 : index
    %c0_132 = arith.constant 0 : index
    %204 = vector.load %arg18[%c32_131, %c0_132] : memref<144x256xbf16, #tpu.memory_space<vmem>>, vector<8x64xbf16>
    tpu.vector_store %arg18[%c32_131, %c0_132], %203 {strides = array<i32>} : memref<144x256xbf16, #tpu.memory_space<vmem>>, vector<8x64xbf16>,
    %205 = vector.extract_strided_slice %180 {offsets = [0, 10], sizes = [8, 64], strides = [1, 1]} : vector<8x82xf32> to vector<8x64xf32>
    %c1_133 = arith.constant 1 : index
    %c0_134 = arith.constant 0 : index
    %206 = vector.load %arg12[%c1_133, %c0_134] : memref<2x64xf32, #tpu.memory_space<vmem>>, vector<1x64xf32>
    %207 = vector.broadcast %206 : vector<1x64xf32> to vector<8x64xf32>
    %208 = arith.mulf %205, %207 : vector<8x64xf32>
    %209 = arith.truncf %208 : vector<8x64xf32> to vector<8x64xbf16>
    %c40_135 = arith.constant 40 : index
    %c0_136 = arith.constant 0 : index
    %210 = vector.load %arg18[%c40_135, %c0_136] : memref<144x256xbf16, #tpu.memory_space<vmem>>, vector<8x64xbf16>
    tpu.vector_store %arg18[%c40_135, %c0_136], %209 {strides = array<i32>} : memref<144x256xbf16, #tpu.memory_space<vmem>>, vector<8x64xbf16>,
    %211 = vector.extract_strided_slice %180 {offsets = [0, 16], sizes = [8, 64], strides = [1, 1]} : vector<8x82xf32> to vector<8x64xf32>
    %c0_137 = arith.constant 0 : index
    %c0_138 = arith.constant 0 : index
    %212 = vector.load %arg12[%c0_137, %c0_138] : memref<2x64xf32, #tpu.memory_space<vmem>>, vector<1x64xf32>
    %213 = vector.broadcast %212 : vector<1x64xf32> to vector<8x64xf32>
    %214 = arith.mulf %211, %213 : vector<8x64xf32>
    %215 = arith.truncf %214 : vector<8x64xf32> to vector<8x64xbf16>
    %c48_139 = arith.constant 48 : index
    %c0_140 = arith.constant 0 : index
    %216 = vector.load %arg18[%c48_139, %c0_140] : memref<144x256xbf16, #tpu.memory_space<vmem>>, vector<8x64xbf16>
    tpu.vector_store %arg18[%c48_139, %c0_140], %215 {strides = array<i32>} : memref<144x256xbf16, #tpu.memory_space<vmem>>, vector<8x64xbf16>,
    %217 = vector.extract_strided_slice %180 {offsets = [0, 17], sizes = [8, 64], strides = [1, 1]} : vector<8x82xf32> to vector<8x64xf32>
    %218 = arith.truncf %217 : vector<8x64xf32> to vector<8x64xbf16>
    %c56_141 = arith.constant 56 : index
    %c0_142 = arith.constant 0 : index
    %219 = vector.load %arg18[%c56_141, %c0_142] : memref<144x256xbf16, #tpu.memory_space<vmem>>, vector<8x64xbf16>
    tpu.vector_store %arg18[%c56_141, %c0_142], %218 {strides = array<i32>} : memref<144x256xbf16, #tpu.memory_space<vmem>>, vector<8x64xbf16>,
    %220 = vector.extract_strided_slice %180 {offsets = [0, 18], sizes = [8, 64], strides = [1, 1]} : vector<8x82xf32> to vector<8x64xf32>
    %c1_143 = arith.constant 1 : index
    %c0_144 = arith.constant 0 : index
    %221 = vector.load %arg12[%c1_143, %c0_144] : memref<2x64xf32, #tpu.memory_space<vmem>>, vector<1x64xf32>
    %222 = vector.broadcast %221 : vector<1x64xf32> to vector<8x64xf32>
    %223 = arith.mulf %220, %222 : vector<8x64xf32>
    %224 = arith.truncf %223 : vector<8x64xf32> to vector<8x64xbf16>
    %c64_145 = arith.constant 64 : index
    %c0_146 = arith.constant 0 : index
    %225 = vector.load %arg18[%c64_145, %c0_146] : memref<144x256xbf16, #tpu.memory_space<vmem>>, vector<8x64xbf16>
    tpu.vector_store %arg18[%c64_145, %c0_146], %224 {strides = array<i32>} : memref<144x256xbf16, #tpu.memory_space<vmem>>, vector<8x64xbf16>,
    %c0_147 = arith.constant 0 : index
    %c0_148 = arith.constant 0 : index
    %226 = vector.load %arg8[%c0_147, %c0_148] : memref<16x72xbf16, #tpu.memory_space<vmem>>, vector<16x72xbf16>
    %c0_149 = arith.constant 0 : index
    %c0_150 = arith.constant 0 : index
    %227 = vector.load %arg18[%c0_149, %c0_150] : memref<144x256xbf16, #tpu.memory_space<vmem>>, vector<72x64xbf16>
    %cst_151 = arith.constant dense<0.000000e+00> : vector<16x64xf32>
    %228 = tpu.matmul %226, %227, %cst_151 {dimension_numbers = #tpu.dot_dimension_numbers<[1], [0], [0], [1], [0, 0, 1, 1], [], []>} : vector<16x72xbf16>, vector<72x64xbf16>, vector<16x64xf32> -> vector<16x64xf32>
    %c0_152 = arith.constant 0 : index
    %c0_153 = arith.constant 0 : index
    %229 = vector.load %arg9[%c0_152, %c0_153] : memref<16x1xf32, #tpu.memory_space<vmem>>, vector<16x1xf32>
    %230 = vector.broadcast %229 : vector<16x1xf32> to vector<16x64xf32>
    %231 = arith.addf %228, %230 : vector<16x64xf32>
    %cst_154 = arith.constant 0.000000e+00 : f32
    %232 = vector.broadcast %cst_154 : f32 to vector<16x64xf32>
    %233 = arith.maximumf %231, %232 : vector<16x64xf32>
    %c0_155 = arith.constant 0 : index
    %c9_156 = arith.constant 9 : index
    %234 = vector.load %arg17[%c0_155, %c9_156] : memref<16x290xf32, #tpu.memory_space<vmem>>, vector<16x64xf32>
    tpu.vector_store %arg17[%c0_155, %c9_156], %233 {strides = array<i32>} : memref<16x290xf32, #tpu.memory_space<vmem>>, vector<16x64xf32>,
    %c0_157 = arith.constant 0 : index
    %c0_158 = arith.constant 0 : index
    %235 = vector.load %arg17[%c0_157, %c0_158] : memref<16x290xf32, #tpu.memory_space<vmem>>, vector<16x82xf32>
    %236 = vector.extract_strided_slice %235 {offsets = [0, 0], sizes = [16, 64], strides = [1, 1]} : vector<16x82xf32> to vector<16x64xf32>
    %c0_159 = arith.constant 0 : index
    %c0_160 = arith.constant 0 : index
    %237 = vector.load %arg12[%c0_159, %c0_160] : memref<2x64xf32, #tpu.memory_space<vmem>>, vector<1x64xf32>
    %238 = vector.broadcast %237 : vector<1x64xf32> to vector<16x64xf32>
    %239 = arith.mulf %236, %238 : vector<16x64xf32>
    %240 = arith.truncf %239 : vector<16x64xf32> to vector<16x64xbf16>
    %c0_161 = arith.constant 0 : index
    %c0_162 = arith.constant 0 : index
    %241 = vector.load %arg18[%c0_161, %c0_162] : memref<144x256xbf16, #tpu.memory_space<vmem>>, vector<16x64xbf16>
    tpu.vector_store %arg18[%c0_161, %c0_162], %240 {strides = array<i32>} : memref<144x256xbf16, #tpu.memory_space<vmem>>, vector<16x64xbf16>,
    %242 = vector.extract_strided_slice %235 {offsets = [0, 1], sizes = [16, 64], strides = [1, 1]} : vector<16x82xf32> to vector<16x64xf32>
    %243 = arith.truncf %242 : vector<16x64xf32> to vector<16x64xbf16>
    %c16_163 = arith.constant 16 : index
    %c0_164 = arith.constant 0 : index
    %244 = vector.load %arg18[%c16_163, %c0_164] : memref<144x256xbf16, #tpu.memory_space<vmem>>, vector<16x64xbf16>
    tpu.vector_store %arg18[%c16_163, %c0_164], %243 {strides = array<i32>} : memref<144x256xbf16, #tpu.memory_space<vmem>>, vector<16x64xbf16>,
    %245 = vector.extract_strided_slice %235 {offsets = [0, 2], sizes = [16, 64], strides = [1, 1]} : vector<16x82xf32> to vector<16x64xf32>
    %c1_165 = arith.constant 1 : index
    %c0_166 = arith.constant 0 : index
    %246 = vector.load %arg12[%c1_165, %c0_166] : memref<2x64xf32, #tpu.memory_space<vmem>>, vector<1x64xf32>
    %247 = vector.broadcast %246 : vector<1x64xf32> to vector<16x64xf32>
    %248 = arith.mulf %245, %247 : vector<16x64xf32>
    %249 = arith.truncf %248 : vector<16x64xf32> to vector<16x64xbf16>
    %c32_167 = arith.constant 32 : index
    %c0_168 = arith.constant 0 : index
    %250 = vector.load %arg18[%c32_167, %c0_168] : memref<144x256xbf16, #tpu.memory_space<vmem>>, vector<16x64xbf16>
    tpu.vector_store %arg18[%c32_167, %c0_168], %249 {strides = array<i32>} : memref<144x256xbf16, #tpu.memory_space<vmem>>, vector<16x64xbf16>,
    %251 = vector.extract_strided_slice %235 {offsets = [0, 8], sizes = [16, 64], strides = [1, 1]} : vector<16x82xf32> to vector<16x64xf32>
    %c0_169 = arith.constant 0 : index
    %c0_170 = arith.constant 0 : index
    %252 = vector.load %arg12[%c0_169, %c0_170] : memref<2x64xf32, #tpu.memory_space<vmem>>, vector<1x64xf32>
    %253 = vector.broadcast %252 : vector<1x64xf32> to vector<16x64xf32>
    %254 = arith.mulf %251, %253 : vector<16x64xf32>
    %255 = arith.truncf %254 : vector<16x64xf32> to vector<16x64xbf16>
    %c48_171 = arith.constant 48 : index
    %c0_172 = arith.constant 0 : index
    %256 = vector.load %arg18[%c48_171, %c0_172] : memref<144x256xbf16, #tpu.memory_space<vmem>>, vector<16x64xbf16>
    tpu.vector_store %arg18[%c48_171, %c0_172], %255 {strides = array<i32>} : memref<144x256xbf16, #tpu.memory_space<vmem>>, vector<16x64xbf16>,
    %257 = vector.extract_strided_slice %235 {offsets = [0, 9], sizes = [16, 64], strides = [1, 1]} : vector<16x82xf32> to vector<16x64xf32>
    %258 = arith.truncf %257 : vector<16x64xf32> to vector<16x64xbf16>
    %c64_173 = arith.constant 64 : index
    %c0_174 = arith.constant 0 : index
    %259 = vector.load %arg18[%c64_173, %c0_174] : memref<144x256xbf16, #tpu.memory_space<vmem>>, vector<16x64xbf16>
    tpu.vector_store %arg18[%c64_173, %c0_174], %258 {strides = array<i32>} : memref<144x256xbf16, #tpu.memory_space<vmem>>, vector<16x64xbf16>,
    %260 = vector.extract_strided_slice %235 {offsets = [0, 10], sizes = [16, 64], strides = [1, 1]} : vector<16x82xf32> to vector<16x64xf32>
    %c1_175 = arith.constant 1 : index
    %c0_176 = arith.constant 0 : index
    %261 = vector.load %arg12[%c1_175, %c0_176] : memref<2x64xf32, #tpu.memory_space<vmem>>, vector<1x64xf32>
    %262 = vector.broadcast %261 : vector<1x64xf32> to vector<16x64xf32>
    %263 = arith.mulf %260, %262 : vector<16x64xf32>
    %264 = arith.truncf %263 : vector<16x64xf32> to vector<16x64xbf16>
    %c80 = arith.constant 80 : index
    %c0_177 = arith.constant 0 : index
    %265 = vector.load %arg18[%c80, %c0_177] : memref<144x256xbf16, #tpu.memory_space<vmem>>, vector<16x64xbf16>
    tpu.vector_store %arg18[%c80, %c0_177], %264 {strides = array<i32>} : memref<144x256xbf16, #tpu.memory_space<vmem>>, vector<16x64xbf16>,
    %266 = vector.extract_strided_slice %235 {offsets = [0, 16], sizes = [16, 64], strides = [1, 1]} : vector<16x82xf32> to vector<16x64xf32>
    %c0_178 = arith.constant 0 : index
    %c0_179 = arith.constant 0 : index
    %267 = vector.load %arg12[%c0_178, %c0_179] : memref<2x64xf32, #tpu.memory_space<vmem>>, vector<1x64xf32>
    %268 = vector.broadcast %267 : vector<1x64xf32> to vector<16x64xf32>
    %269 = arith.mulf %266, %268 : vector<16x64xf32>
    %270 = arith.truncf %269 : vector<16x64xf32> to vector<16x64xbf16>
    %c96 = arith.constant 96 : index
    %c0_180 = arith.constant 0 : index
    %271 = vector.load %arg18[%c96, %c0_180] : memref<144x256xbf16, #tpu.memory_space<vmem>>, vector<16x64xbf16>
    tpu.vector_store %arg18[%c96, %c0_180], %270 {strides = array<i32>} : memref<144x256xbf16, #tpu.memory_space<vmem>>, vector<16x64xbf16>,
    %272 = vector.extract_strided_slice %235 {offsets = [0, 17], sizes = [16, 64], strides = [1, 1]} : vector<16x82xf32> to vector<16x64xf32>
    %273 = arith.truncf %272 : vector<16x64xf32> to vector<16x64xbf16>
    %c112 = arith.constant 112 : index
    %c0_181 = arith.constant 0 : index
    %274 = vector.load %arg18[%c112, %c0_181] : memref<144x256xbf16, #tpu.memory_space<vmem>>, vector<16x64xbf16>
    tpu.vector_store %arg18[%c112, %c0_181], %273 {strides = array<i32>} : memref<144x256xbf16, #tpu.memory_space<vmem>>, vector<16x64xbf16>,
    %275 = vector.extract_strided_slice %235 {offsets = [0, 18], sizes = [16, 64], strides = [1, 1]} : vector<16x82xf32> to vector<16x64xf32>
    %c1_182 = arith.constant 1 : index
    %c0_183 = arith.constant 0 : index
    %276 = vector.load %arg12[%c1_182, %c0_183] : memref<2x64xf32, #tpu.memory_space<vmem>>, vector<1x64xf32>
    %277 = vector.broadcast %276 : vector<1x64xf32> to vector<16x64xf32>
    %278 = arith.mulf %275, %277 : vector<16x64xf32>
    %279 = arith.truncf %278 : vector<16x64xf32> to vector<16x64xbf16>
    %c128 = arith.constant 128 : index
    %c0_184 = arith.constant 0 : index
    %280 = vector.load %arg18[%c128, %c0_184] : memref<144x256xbf16, #tpu.memory_space<vmem>>, vector<16x64xbf16>
    tpu.vector_store %arg18[%c128, %c0_184], %279 {strides = array<i32>} : memref<144x256xbf16, #tpu.memory_space<vmem>>, vector<16x64xbf16>,
    %c0_185 = arith.constant 0 : index
    %c0_186 = arith.constant 0 : index
    %281 = vector.load %arg10[%c0_185, %c0_186] : memref<16x144xbf16, #tpu.memory_space<vmem>>, vector<16x144xbf16>
    %c0_187 = arith.constant 0 : index
    %c0_188 = arith.constant 0 : index
    %282 = vector.load %arg18[%c0_187, %c0_188] : memref<144x256xbf16, #tpu.memory_space<vmem>>, vector<144x64xbf16>
    %cst_189 = arith.constant dense<0.000000e+00> : vector<16x64xf32>
    %283 = tpu.matmul %281, %282, %cst_189 {dimension_numbers = #tpu.dot_dimension_numbers<[1], [0], [0], [1], [0, 0, 1, 1], [], []>} : vector<16x144xbf16>, vector<144x64xbf16>, vector<16x64xf32> -> vector<16x64xf32>
    %c0_190 = arith.constant 0 : index
    %c0_191 = arith.constant 0 : index
    %284 = vector.load %arg11[%c0_190, %c0_191] : memref<16x1xf32, #tpu.memory_space<vmem>>, vector<16x1xf32>
    %285 = vector.broadcast %284 : vector<16x1xf32> to vector<16x64xf32>
    %286 = arith.addf %283, %285 : vector<16x64xf32>
    %cst_192 = arith.constant 0.000000e+00 : f32
    %287 = vector.broadcast %cst_192 : f32 to vector<16x64xf32>
    %288 = arith.maximumf %286, %287 : vector<16x64xf32>
    %c0_193 = arith.constant 0 : index
    %c0_194 = arith.constant 0 : index
    %c0_195 = arith.constant 0 : index
    %289 = vector.load %arg16[%c0_193, %c0_194, %c0_195] : memref<1x16x64xf32, #tpu.memory_space<vmem>>, vector<1x16x64xf32>
    %290 = vector.shape_cast %289 : vector<1x16x64xf32> to vector<16x64xf32>
    %291 = vector.shape_cast %288 : vector<16x64xf32> to vector<1x16x64xf32>
    tpu.vector_store %arg16[%c0_193, %c0_194, %c0_195], %291 {strides = array<i32>} : memref<1x16x64xf32, #tpu.memory_space<vmem>>, vector<1x16x64xf32>,
    %292 = vector.extract_strided_slice %288 {offsets = [0, 0], sizes = [16, 56], strides = [1, 1]} : vector<16x64xf32> to vector<16x56xf32>
    %293 = vector.extract_strided_slice %288 {offsets = [0, 8], sizes = [16, 56], strides = [1, 1]} : vector<16x64xf32> to vector<16x56xf32>
    %294 = arith.maximumf %292, %293 : vector<16x56xf32>
    %295 = vector.extract_strided_slice %294 {offsets = [0, 0], sizes = [16, 8], strides = [1, 1]} : vector<16x56xf32> to vector<16x8xf32>
    %296 = vector.extract_strided_slice %295 {offsets = [0, 0], sizes = [16, 7], strides = [1, 1]} : vector<16x8xf32> to vector<16x7xf32>
    %297 = vector.extract_strided_slice %295 {offsets = [0, 1], sizes = [16, 7], strides = [1, 1]} : vector<16x8xf32> to vector<16x7xf32>
    %298 = arith.maximumf %296, %297 : vector<16x7xf32>
    %c0_196 = arith.constant 0 : index
    %c0_197 = arith.constant 0 : index
    %299 = vector.load %arg13[%c0_196, %c0_197] : memref<7x4xf32, #tpu.memory_space<vmem>>, vector<7x4xf32>
    %cst_198 = arith.constant dense<0.000000e+00> : vector<16x4xf32>
    %300 = tpu.matmul %298, %299, %cst_198 {dimension_numbers = #tpu.dot_dimension_numbers<[1], [0], [0], [1], [0, 0, 1, 1], [], []>} : vector<16x7xf32>, vector<7x4xf32>, vector<16x4xf32> -> vector<16x4xf32>
    %c0_199 = arith.constant 0 : index
    %c5 = arith.constant 5 : index
    %301 = vector.load %arg17[%c0_199, %c5] : memref<16x290xf32, #tpu.memory_space<vmem>>, vector<16x4xf32>
    tpu.vector_store %arg17[%c0_199, %c5], %300 {strides = array<i32>} : memref<16x290xf32, #tpu.memory_space<vmem>>, vector<16x4xf32>,
    %302 = vector.extract_strided_slice %294 {offsets = [0, 16], sizes = [16, 8], strides = [1, 1]} : vector<16x56xf32> to vector<16x8xf32>
    %303 = vector.extract_strided_slice %302 {offsets = [0, 0], sizes = [16, 7], strides = [1, 1]} : vector<16x8xf32> to vector<16x7xf32>
    %304 = vector.extract_strided_slice %302 {offsets = [0, 1], sizes = [16, 7], strides = [1, 1]} : vector<16x8xf32> to vector<16x7xf32>
    %305 = arith.maximumf %303, %304 : vector<16x7xf32>
    %c0_200 = arith.constant 0 : index
    %c0_201 = arith.constant 0 : index
    %306 = vector.load %arg13[%c0_200, %c0_201] : memref<7x4xf32, #tpu.memory_space<vmem>>, vector<7x4xf32>
    %cst_202 = arith.constant dense<0.000000e+00> : vector<16x4xf32>
    %307 = tpu.matmul %305, %306, %cst_202 {dimension_numbers = #tpu.dot_dimension_numbers<[1], [0], [0], [1], [0, 0, 1, 1], [], []>} : vector<16x7xf32>, vector<7x4xf32>, vector<16x4xf32> -> vector<16x4xf32>
    %c0_203 = arith.constant 0 : index
    %c9_204 = arith.constant 9 : index
    %308 = vector.load %arg17[%c0_203, %c9_204] : memref<16x290xf32, #tpu.memory_space<vmem>>, vector<16x4xf32>
    tpu.vector_store %arg17[%c0_203, %c9_204], %307 {strides = array<i32>} : memref<16x290xf32, #tpu.memory_space<vmem>>, vector<16x4xf32>,
    %309 = vector.extract_strided_slice %294 {offsets = [0, 32], sizes = [16, 8], strides = [1, 1]} : vector<16x56xf32> to vector<16x8xf32>
    %310 = vector.extract_strided_slice %309 {offsets = [0, 0], sizes = [16, 7], strides = [1, 1]} : vector<16x8xf32> to vector<16x7xf32>
    %311 = vector.extract_strided_slice %309 {offsets = [0, 1], sizes = [16, 7], strides = [1, 1]} : vector<16x8xf32> to vector<16x7xf32>
    %312 = arith.maximumf %310, %311 : vector<16x7xf32>
    %c0_205 = arith.constant 0 : index
    %c0_206 = arith.constant 0 : index
    %313 = vector.load %arg13[%c0_205, %c0_206] : memref<7x4xf32, #tpu.memory_space<vmem>>, vector<7x4xf32>
    %cst_207 = arith.constant dense<0.000000e+00> : vector<16x4xf32>
    %314 = tpu.matmul %312, %313, %cst_207 {dimension_numbers = #tpu.dot_dimension_numbers<[1], [0], [0], [1], [0, 0, 1, 1], [], []>} : vector<16x7xf32>, vector<7x4xf32>, vector<16x4xf32> -> vector<16x4xf32>
    %c0_208 = arith.constant 0 : index
    %c13 = arith.constant 13 : index
    %315 = vector.load %arg17[%c0_208, %c13] : memref<16x290xf32, #tpu.memory_space<vmem>>, vector<16x4xf32>
    tpu.vector_store %arg17[%c0_208, %c13], %314 {strides = array<i32>} : memref<16x290xf32, #tpu.memory_space<vmem>>, vector<16x4xf32>,
    %316 = vector.extract_strided_slice %294 {offsets = [0, 48], sizes = [16, 8], strides = [1, 1]} : vector<16x56xf32> to vector<16x8xf32>
    %317 = vector.extract_strided_slice %316 {offsets = [0, 0], sizes = [16, 7], strides = [1, 1]} : vector<16x8xf32> to vector<16x7xf32>
    %318 = vector.extract_strided_slice %316 {offsets = [0, 1], sizes = [16, 7], strides = [1, 1]} : vector<16x8xf32> to vector<16x7xf32>
    %319 = arith.maximumf %317, %318 : vector<16x7xf32>
    %c0_209 = arith.constant 0 : index
    %c0_210 = arith.constant 0 : index
    %320 = vector.load %arg13[%c0_209, %c0_210] : memref<7x4xf32, #tpu.memory_space<vmem>>, vector<7x4xf32>
    %cst_211 = arith.constant dense<0.000000e+00> : vector<16x4xf32>
    %321 = tpu.matmul %319, %320, %cst_211 {dimension_numbers = #tpu.dot_dimension_numbers<[1], [0], [0], [1], [0, 0, 1, 1], [], []>} : vector<16x7xf32>, vector<7x4xf32>, vector<16x4xf32> -> vector<16x4xf32>
    %c0_212 = arith.constant 0 : index
    %c17_213 = arith.constant 17 : index
    %322 = vector.load %arg17[%c0_212, %c17_213] : memref<16x290xf32, #tpu.memory_space<vmem>>, vector<16x4xf32>
    tpu.vector_store %arg17[%c0_212, %c17_213], %321 {strides = array<i32>} : memref<16x290xf32, #tpu.memory_space<vmem>>, vector<16x4xf32>,
    %c0_214 = arith.constant 0 : index
    %c5_215 = arith.constant 5 : index
    %323 = vector.load %arg17[%c0_214, %c5_215] : memref<16x290xf32, #tpu.memory_space<vmem>>, vector<16x16xf32>
    %c0_216 = arith.constant 0 : index
    %c0_217 = arith.constant 0 : index
    %c0_218 = arith.constant 0 : index
    %324 = vector.load %arg14[%c0_216, %c0_217, %c0_218] : memref<1x16x16xf32, #tpu.memory_space<vmem>>, vector<1x16x16xf32>
    %325 = vector.shape_cast %324 : vector<1x16x16xf32> to vector<16x16xf32>
    %326 = vector.shape_cast %323 : vector<16x16xf32> to vector<1x16x16xf32>
    tpu.vector_store %arg14[%c0_216, %c0_217, %c0_218], %326 {strides = array<i32>} : memref<1x16x16xf32, #tpu.memory_space<vmem>>, vector<1x16x16xf32>,
    return
  }
  func.func @transform_0(%arg0: i32) -> (i32, i32, i32) {
    %c0_i32 = arith.constant 0 : i32
    %c0_i32_0 = arith.constant 0 : i32
    %c0_i32_1 = arith.constant 0 : i32
    return %arg0, %c0_i32, %c0_i32_0 : i32, i32, i32
  }
  func.func @transform_1(%arg0: i32) -> (i32, i32) {
    %c0_i32 = arith.constant 0 : i32
    %c0_i32_0 = arith.constant 0 : i32
    %c0_i32_1 = arith.constant 0 : i32
    return %c0_i32, %c0_i32_0 : i32, i32
  }
  func.func @transform_2(%arg0: i32) -> (i32, i32) {
    %c0_i32 = arith.constant 0 : i32
    %c0_i32_0 = arith.constant 0 : i32
    %c0_i32_1 = arith.constant 0 : i32
    return %c0_i32, %c0_i32_0 : i32, i32
  }
  func.func @transform_3(%arg0: i32) -> (i32, i32) {
    %c0_i32 = arith.constant 0 : i32
    %c0_i32_0 = arith.constant 0 : i32
    %c0_i32_1 = arith.constant 0 : i32
    return %c0_i32, %c0_i32_0 : i32, i32
  }
  func.func @transform_4(%arg0: i32) -> (i32, i32) {
    %c0_i32 = arith.constant 0 : i32
    %c0_i32_0 = arith.constant 0 : i32
    %c0_i32_1 = arith.constant 0 : i32
    return %c0_i32, %c0_i32_0 : i32, i32
  }
  func.func @transform_5(%arg0: i32) -> (i32, i32) {
    %c0_i32 = arith.constant 0 : i32
    %c0_i32_0 = arith.constant 0 : i32
    %c0_i32_1 = arith.constant 0 : i32
    return %c0_i32, %c0_i32_0 : i32, i32
  }
  func.func @transform_6(%arg0: i32) -> (i32, i32) {
    %c0_i32 = arith.constant 0 : i32
    %c0_i32_0 = arith.constant 0 : i32
    %c0_i32_1 = arith.constant 0 : i32
    return %c0_i32, %c0_i32_0 : i32, i32
  }
  func.func @transform_7(%arg0: i32) -> (i32, i32) {
    %c0_i32 = arith.constant 0 : i32
    %c0_i32_0 = arith.constant 0 : i32
    %c0_i32_1 = arith.constant 0 : i32
    return %c0_i32, %c0_i32_0 : i32, i32
  }
  func.func @transform_8(%arg0: i32) -> (i32, i32) {
    %c0_i32 = arith.constant 0 : i32
    %c0_i32_0 = arith.constant 0 : i32
    %c0_i32_1 = arith.constant 0 : i32
    return %c0_i32, %c0_i32_0 : i32, i32
  }
  func.func @transform_9(%arg0: i32) -> (i32, i32) {
    %c0_i32 = arith.constant 0 : i32
    %c0_i32_0 = arith.constant 0 : i32
    %c0_i32_1 = arith.constant 0 : i32
    return %c0_i32, %c0_i32_0 : i32, i32
  }
  func.func @transform_10(%arg0: i32) -> (i32, i32) {
    %c0_i32 = arith.constant 0 : i32
    %c0_i32_0 = arith.constant 0 : i32
    %c0_i32_1 = arith.constant 0 : i32
    return %c0_i32, %c0_i32_0 : i32, i32
  }
  func.func @transform_11(%arg0: i32) -> (i32, i32) {
    %c0_i32 = arith.constant 0 : i32
    %c0_i32_0 = arith.constant 0 : i32
    %c0_i32_1 = arith.constant 0 : i32
    return %c0_i32, %c0_i32_0 : i32, i32
  }
  func.func @transform_12(%arg0: i32) -> (i32, i32) {
    %c0_i32 = arith.constant 0 : i32
    %c0_i32_0 = arith.constant 0 : i32
    %c0_i32_1 = arith.constant 0 : i32
    return %c0_i32, %c0_i32_0 : i32, i32
  }
  func.func @transform_13(%arg0: i32) -> (i32, i32, i32) {
    %c0_i32 = arith.constant 0 : i32
    %c0_i32_0 = arith.constant 0 : i32
    %c0_i32_1 = arith.constant 0 : i32
    return %arg0, %c0_i32, %c0_i32_0 : i32, i32, i32
  }
  func.func @transform_14(%arg0: i32) -> (i32, i32, i32) {
    %c0_i32 = arith.constant 0 : i32
    %c0_i32_0 = arith.constant 0 : i32
    %c0_i32_1 = arith.constant 0 : i32
    return %arg0, %c0_i32, %c0_i32_0 : i32, i32, i32
  }
  func.func @transform_15(%arg0: i32) -> (i32, i32, i32) {
    %c0_i32 = arith.constant 0 : i32
    %c0_i32_0 = arith.constant 0 : i32
    %c0_i32_1 = arith.constant 0 : i32
    return %arg0, %c0_i32, %c0_i32_0 : i32, i32, i32
  }
}

</mosaic_0001>

<bundles_post_ra>
// kernel: encoder_forward.1
= control target key start
LH: loop header
LB: loop body
LE: loop exit
PB: predicated region body
PF: predicated region fallthrough
CT: control target
= control target key end

     0   :  { %s2607_s18 = smov 0   ;;  %s3042_s0 = inlined_call_operand.vmem [shape: f32[2,4,256], index: 0, kind: input, shape index: {}]   ;;  %s3043_s1 = inlined_call_operand.vmem [shape: bf16[8,36], index: 1, kind: input, shape index: {}]   ;;  %s3044_s2 = inlined_call_operand.vmem [shape: f32[8,1], index: 2, kind: input, shape index: {}]   ;;  %s3045_s3 = inlined_call_operand.vmem [shape: bf16[8,72], index: 3, kind: input, shape index: {}]   ;;  %s3046_s4 = inlined_call_operand.vmem [shape: f32[8,1], index: 4, kind: input, shape index: {}]   ;;  %s3047_s5 = inlined_call_operand.vmem [shape: f32[2,256], index: 5, kind: input, shape index: {}]   ;;  %s3048_s6 = inlined_call_operand.vmem [shape: f32[15,8], index: 6, kind: input, shape index: {}]   ;;  %s3049_s7 = inlined_call_operand.vmem [shape: bf16[16,72], index: 7, kind: input, shape index: {}]   ;;  %s3050_s8 = inlined_call_operand.vmem [shape: f32[16,1], index: 8, kind: input, shape index: {}]   ;;  %s3051_s9 = inlined_call_operand.vmem [shape: bf16[16,144], index: 9, kind: input, shape index: {}]   ;;  %s3052_s10 = inlined_call_operand.vmem [shape: f32[16,1], index: 10, kind: input, shape index: {}]   ;;  %s3053_s11 = inlined_call_operand.vmem [shape: f32[2,64], index: 11, kind: input, shape index: {}]   ;;  %s3054_s12 = inlined_call_operand.vmem [shape: f32[7,4], index: 12, kind: input, shape index: {}]   ;;  %s3055_s13 = inlined_call_operand.vmem [shape: f32[2,16,16], index: 13, kind: output, shape index: {0}]   ;;  %s3056_s14 = inlined_call_operand.vmem [shape: f32[2,8,256], index: 14, kind: output, shape index: {1}]   ;;  %s3057_s15 = inlined_call_operand.vmem [shape: f32[2,16,64], index: 15, kind: output, shape index: {2}]  }
   0x1   :  { %3090 = sst [smem:[#allocation4_spill]] %s3042_s0 }
   0x2   :  { %3091 = sst [smem:[#allocation5_spill]] %s3043_s1 }
   0x3 LB: > { %s2230_s19 = sadd.s32 4294967295, %s2492_s18   ;;  %p2234_p0 = scmp.ge.s32.totalorder %s2492_s18, 1  ;;  %s2492_s18 = sphi %s2607_s18, %s26_s18  }
   0x4   : > { %p442_p1 = scmp.lt.s32.totalorder %s2492_s18, 3 }
   0x6   : > { %p443_p2 = pnand %p2234_p0, %p442_p1 }
   0x7   : > { %p500_p3 = scmp.lt.s32.totalorder (!%p443_p2), %s2230_s19, 1  ;;  %s2494_s22 = smov (!%p443_p2), 34  }
   0x8   : > { %446 = sbr.rel (%p443_p2) target bundleno = 2949 (0xb85), region = 72  ;;  %s3092_s0 = sld [smem:[#allocation4_spill]] (!%p443_p2) }
   0x9   : > { %s3074_s29 = smov (!%p443_p2), 18   ;;  %s3080_s17 = smov (!%p443_p2), 17  }
   0xa   : > { %s2497_s23 = smov (!%p443_p2), 32   ;;  %s3072_s26 = smov (!%p443_p2), 16  }
   0xb   : > { %s3070_s27 = smov (!%p443_p2), 2   ;;  %s3068_s16 = smov (!%p443_p2), 111  }
   0xc   : > { %s3064_s20 = smov (!%p443_p2), 94   ;;  %s2503_s21 = smov (!%p443_p2), 95  }
   0xd   : > { %v2245_v0 = vld [vmem:[%s3047_s5 + $0x1] ss:$2 sm:$0x3]  ;;  %s3112_s19 = smov (!%p500_p3, %s2230_s19), 1  ;;  %vm523_vm0 = vcmask 277504   ;;  %v2500_v18 = vmov 0.0  }
   0xe   : > { %v731_v1 = vperm.slane %v2245_v0, 0  ;;  %v2244_v2 = vld [vmem:[%s3047_s5 + $0x1] ss:$2 sm:$0x3]  ;;  %s2397_s25 = sshll.u32 %s3112_s19, 3  ;;  %v732_v5 = vperm.slane %v2245_v0, 1 }
   0xf   : > { %v656_v3 = vperm.slane %v2244_v2, 0  ;;  %s504_s28 = scalar_lea.vmem %s3092_s0, %s2397_s25  ;;  %v657_v6 = vperm.slane %v2244_v2, 1  ;;  %v687_v7 = vld [vmem:[%s3047_s5] ss:$2 sm:$0x3]  ;;  %526 = vst [vmem:[#allocation2 + $0x20] sm:$0xff] %v2500_v18 }
  0x10   : > { %733 = vrot.lane.b32.xlu1 %v731_v1, %s2494_s22  ;;  %v528_v4 = vld [vmem:[%s504_s28] sm:$0xff]  ;;  %v690_v9 = vperm.slane %v687_v7, 1  ;;  %v689_v16 = vperm.slane %v687_v7, 0  ;;  %521 = vst [vmem:[#allocation2] sm:$0xff] %v2500_v18  ;;  %vm542_vm1 = vcmask 1043592   ;;  %vm537_vm2 = vcmask 138240  }
  0x11   : > { %658 = vrot.lane.b32.xlu2 %v656_v3, %s3074_s29  ;;  %530 = vst [vmem:[#allocation1] ss:$2 sm:$0xff] %v528_v4  ;;  %v610_v10 = vld [vmem:[%s3047_s5] ss:$2 sm:$0x3]  ;;  %vm545_vm3 = vcmask 134144  }
  0x12   : > { %v612_v11 = vperm.slane %v610_v10, 0  ;;  %v2243_v13 = vld [vmem:[%s3047_s5 + $0x1] ss:$2 sm:$0x3]  ;;  %v613_v17 = vperm.slane %v610_v10, 1  ;;  %522 = vst [vmem:[#allocation2 + $0x8] sm:$0xff] %v2500_v18 }
  0x13   : > { %v581_v14 = vperm.slane %v2243_v13, 0  ;;  %v582_v15 = vperm.slane %v2243_v13, 1  ;;  %524 = vst.msk [vmem:[#allocation2 + $0x10] sm:$0xff] %vm523_vm0, %v2500_v18  ;;  %v550_v24 = vld [vmem:[%s3047_s5] ss:$2 sm:$0x3] }
  0x14   : > { %525 = vst [vmem:[#allocation2 + $0x18] sm:$0xff] %v2500_v18  ;;  %v553_v26 = vperm.slane %v550_v24, 1  ;;  %v552_v27 = vperm.slane %v550_v24, 0  ;;  %s3058_s24 = smov 127   ;;  %vm662_vm4 = vcmask 146432   ;;  %vm695_vm5 = vcmask 261120  }
  0x15   : > { %s3076_s25 = smov 96   ;;  %vm618_vm6 = vcmask 130048   ;;  %vm587_vm7 = vcmask 15360   ;;  %s3062_s28 = smov 110   ;;  %vm572_vm8 = vcmask 1043456   ;;  %vm650_vm9 = vcmask 908288  }
  0x16   : > { %s3066_s30 = smov 126   ;;  %vm725_vm10 = vcmask 777216   ;;  %vm755_vm11 = vcmask 769024   ;;  %vm574_vm12 = vcmask 1039360   ;;  %vm714_vm13 = vcmask 785408   ;;  %s3093_s1 = sld [smem:[#allocation5_spill]] }
  0x17   : > { %vm683_vm14 = vcmask 900096   ;;  %vm800_vm15 = vcmask 1041408  }
  0x18   : > { %735 = vrot.lane.b32.xlu1 %v732_v5, %s2494_s22  ;;  %v531_v8 = vld.sshfl [vmem:[#allocation1] sm:$0xff pattern:$0x75316420]  ;;  %v532_v12 = vld.sshfl [vmem:[#allocation1 + $0x8] sm:$0xff pattern:$0x75316420] }
  0x19   : > { %660 = vrot.lane.b32.xlu2 %v657_v6, %s3074_s29  ;;  %533 = vrot.lane.b32.xlu0 %v531_v8, %s3080_s17 }
  0x20   : > { %693 = vrot.lane.b32.xlu1 %v690_v9, %s2497_s23 }
  0x21   : > { %614 = vrot.lane.b32.xlu2 %v612_v11, %s3072_s26  ;;  %535 = vrot.lane.b32.xlu0 %v532_v12, %s3080_s17 }
  0x28   : > { %583 = vrot.lane.b32.xlu1 %v581_v14, %s3070_s27 }
  0x29   : > { %585 = vrot.lane.b32.xlu2 %v582_v15, %s3070_s27  ;;  %691 = vrot.lane.b32.xlu0 %v689_v16, %s2497_s23 }
  0x31   : > { %616 = vrot.lane.b32.xlu0 %v613_v17, %s3072_s26 }
  0x6b   : > { %v659_v22 = vpop.permute.xlu2 %658 }
  0x73   : > { %v661_v34 = vpop.permute.xlu2 %660 }
  0x74   : > { %v663_v49 = vsel %vm662_vm4, %v659_v22, %v661_v34 }
  0x7b   : > { %v615_v44 = vpop.permute.xlu2 %614 }
  0x82   : > { %v734_v20 = vpop.permute.xlu1 %733 }
  0x83   : > { %v586_v58 = vpop.permute.xlu2 %585 }
  0x8a   : > { %v736_v25 = vpop.permute.xlu1 %735 }
  0x8b   : > { %v534_v19 = vpop.permute.xlu0 %533  ;;  %v737_v43 = vsel %vm523_vm0, %v734_v20, %v736_v25 }
  0x8c   : > { %543 = vst.msk [vmem:[#allocation2] sm:$0xf] %vm542_vm1, %v534_v19  ;;  %vm606_vm1 = vcmask 1031168  }
  0x92   : > { %v694_v39 = vpop.permute.xlu1 %693 }
  0x93   : > { %v536_v21 = vpop.permute.xlu0 %535  ;;  %v2655_v29 = vld [vmem:[#allocation2] sm:$0xf] }
  0x94   : > { %v538_v23 = vsel %vm537_vm2, %v534_v19, %v536_v21  ;;  %546 = vst.msk [vmem:[#allocation2 + $0x10] sm:$0xf] %vm545_vm3, %v536_v21  ;;  %v556_v36 = vmul.f32 %v552_v27, %v2655_v29  ;;  %v741_v47 = vmul.f32 %v734_v20, %v2655_v29  ;;  %v667_v60 = vmul.f32 %v659_v22, %v2655_v29 }
  0x95   : > { %544 = vst [vmem:[#allocation2 + $0x8] sm:$0xf] %v538_v23  ;;  %v623_v3 = vmul.f32 %v615_v44, %v2655_v29  ;;  %vm639_vm3 = vcmask 916480  }
  0x9a   : > { %v584_v61 = vpop.permute.xlu1 %583 }
  0x9b   : > { %v2653_v28 = vld [vmem:[#allocation2 + $0x10] sm:$0xf]  ;;  %v692_v42 = vpop.permute.xlu0 %691  ;;  %v588_v0 = vsel %vm587_vm7, %v584_v61, %v586_v58  ;;  %v592_v7 = vmul.f32 %v584_v61, %v2655_v29 }
  0x9c   : > { %v548_v30 = vld [vmem:[#allocation2 + $0x8] sm:$0xf]  ;;  %v561_v31 = vpack.c.bf16 %v2653_v28, %v2653_v28  ;;  %v743_v35 = vmul.f32 %v736_v25, %v2653_v28  ;;  %v702_v41 = vmul.f32 %v694_v39, %v2653_v28  ;;  %v696_v50 = vsel %vm695_vm5, %v692_v42, %v694_v39 }
  0x9d   : > { %v557_v32 = vmul.f32 %v553_v26, %v548_v30  ;;  %v560_v33 = vpack.c.bf16 %v548_v30, %v2655_v29  ;;  %v742_v46 = vmul.f32 %v737_v43, %v548_v30  ;;  %v669_v52 = vmul.f32 %v661_v34, %v2653_v28 }
  0x9e   : > { %645 = vrot.lane.b32.xlu0 %v561_v31, %s3068_s16  ;;  %v745_v37 = vpack.c.bf16 %v743_v35, %v743_v35  ;;  %v565_v40 = vrot.slane %v561_v31, 6  ;;  %v704_v45 = vpack.c.bf16 %v702_v41, %v702_v41  ;;  %v700_v54 = vmul.f32 %v692_v42, %v2655_v29 }
  0x9f   : > { %643 = vrot.lane.b32.xlu2 %v560_v33, %s3068_s16  ;;  %v558_v38 = vpack.c.bf16 %v557_v32, %v556_v36  ;;  %v744_v48 = vpack.c.bf16 %v742_v46, %v741_v47  ;;  %v564_v51 = vrot.slane %v560_v33, 6  ;;  %v701_v55 = vmul.f32 %v696_v50, %v548_v30 }
  0xa0   : > { %750 = vrot.lane.b32.xlu1 %v745_v37, %s3064_s20  ;;  %v668_v56 = vmul.f32 %v663_v49, %v548_v30  ;;  %v671_v57 = vpack.c.bf16 %v669_v52, %v669_v52  ;;  %v593_v4 = vmul.f32 %v588_v0, %v548_v30  ;;  %v594_v8 = vmul.f32 %v586_v58, %v2653_v28  ;;  %v973_v0 = vld [vmem:[%s3047_s5] ss:$2 sm:$0x3] }
  0xa1   : > { %559 = vst [vmem:[#allocation3] sm:$0x33] %v558_v38  ;;  %v703_v62 = vpack.c.bf16 %v701_v55, %v700_v54  ;;  %v2509_v46 = vmov 0   ;;  %v2708_v54 = vld [vmem:[%s3047_s5 + $0x1] ss:$2 sm:$0x3] }
  0xa2   : > { %v670_v63 = vpack.c.bf16 %v668_v56, %v667_v60  ;;  %v675_v2 = vrot.slane %v671_v57, 6  ;;  %v595_v10 = vpack.c.bf16 %v593_v4, %v592_v7  ;;  %v596_v12 = vpack.c.bf16 %v594_v8, %v594_v8  ;;  %2470 = vset.pattern.permute.xlu1 %v2509_v46  ;;  %2471 = vset.pattern.permute.xlu0 %v2509_v46 }
  0xa3   : > { %v617_v53 = vpop.permute.xlu0 %616  ;;  %2472 = vset.pattern.permute.xlu2 %v2509_v46  ;;  %v1014_v60 = vperm.slane %v2708_v54, 0 }
  0xa4   : > { %v619_v59 = vsel %vm618_vm6, %v615_v44, %v617_v53  ;;  %v674_v5 = vrot.slane %v670_v63, 6  ;;  %v625_v9 = vmul.f32 %v617_v53, %v2653_v28  ;;  %v765_v44 = vld [vmem:[%s3044_s2] sm:$0xff] }
  0xa5   : > { %v624_v1 = vmul.f32 %v619_v59, %v548_v30 }
  0xa6   : > { %720 = vrot.lane.b32.xlu0 %v565_v40, %s2503_s21  ;;  %v627_v13 = vpack.c.bf16 %v625_v9, %v625_v9 }
  0xa7   : > { %568 = vrot.lane.b32.xlu2 %v565_v40, %s3058_s24  ;;  %v626_v6 = vpack.c.bf16 %v624_v1, %v623_v3 }
  0xa8   : > { %709 = vrot.lane.b32.xlu1 %v704_v45, %s3076_s25  ;;  %v631_v14 = vrot.slane %v627_v13, 6 }
  0xa9   : > { %v630_v11 = vrot.slane %v626_v6, 6  ;;  %v976_v6 = vperm.slane %v973_v0, 1 }
  0xae   : > { %748 = vrot.lane.b32.xlu0 %v744_v48, %s3064_s20  ;;  %s3094_s20 = smov 126  }
  0xaf   : > { %718 = vrot.lane.b32.xlu2 %v564_v51, %s2503_s21 }
  0xb0   : > { %566 = vrot.lane.b32.xlu1 %v564_v51, %s3058_s24  ;;  %s3060_s24 = smov 112  }
  0xb6   : > { %707 = vrot.lane.b32.xlu0 %v703_v62, %s3076_s25 }
  0xb7   : > { %678 = vrot.lane.b32.xlu2 %v675_v2, %s3062_s28 }
  0xb8   : > { %676 = vrot.lane.b32.xlu1 %v674_v5, %s3062_s28  ;;  %s3097_s28 = smov 112  }
  0xbe   : > { %599 = vrot.lane.b32.xlu0 %v595_v10, %s3066_s30 }
  0xbf   : > { %632 = vrot.lane.b32.xlu2 %v630_v11, %s3060_s24 }
  0xc0   : > { %601 = vrot.lane.b32.xlu1 %v596_v12, %s3066_s30  ;;  %s3095_s30 = smov 94  }
  0xc6   : > { %634 = vrot.lane.b32.xlu0 %v631_v14, %s3060_s24  ;;  %s2515_s24 = smov 49  }
  0xc8   : > { %768 = vperm.xlu1 %2470, %v765_v44  }
  0xd0   : > { %1016 = vrot.lane.b32.xlu1 %v1014_v60, %s2494_s22 }
  0xd8   : > { %979 = vrot.lane.b32.xlu1 %v976_v6, %s2497_s23 }
  0xf9   : > { %v644_v15 = vpop.permute.xlu2 %643 }
  0xfa   : > { %v647_v18 = vrot.slane %v644_v15, 4 }
 0x101   : > { %v569_v16 = vpop.permute.xlu2 %568 }
 0x102   : > { %v571_v36 = vrot.slane %v569_v16, 4 }
 0x109   : > { %v719_v23 = vpop.permute.xlu2 %718 }
 0x10a   : > { %v722_v25 = vrot.slane %v719_v23, 4 }
 0x110   : > { %v646_v17 = vpop.permute.xlu0 %645 }
 0x111   : > { %v648_v19 = vrot.slane %v646_v17, 4  ;;  %v679_v41 = vpop.permute.xlu2 %678 }
 0x112   : > { %v751_v22 = vpop.permute.xlu1 %750  ;;  %v681_v47 = vrot.slane %v679_v41, 4 }
 0x113   : > { %v649_v20 = vsel %vm572_vm8, %v647_v18, %v648_v19  ;;  %v753_v31 = vrot.slane %v751_v22, 4  ;;  %v2264_v18 = vld [vmem:[%s3047_s5 + $0x1] ss:$2 sm:$0x3] }
 0x114   : > { %v651_v21 = vsel %vm650_vm9, %v644_v15, %v649_v20  ;;  %v878_v19 = vperm.slane %v2264_v18, 0  ;;  %v879_v44 = vperm.slane %v2264_v18, 1 }
 0x115   : > { %653 = vst [vmem:[#allocation3 + $0x10] sm:$0x33] %v651_v21 }
 0x116   : > { %880 = vrot.lane.b32.xlu1 %v878_v19, %s3070_s27 }
 0x118   : > { %v721_v24 = vpop.permute.xlu0 %720 }
 0x119   : > { %v723_v26 = vrot.slane %v721_v24, 4  ;;  %v633_v3 = vpop.permute.xlu2 %632 }
 0x11a   : > { %v710_v29 = vpop.permute.xlu1 %709  ;;  %v636_v12 = vrot.slane %v633_v3, 4 }
 0x11b   : > { %v724_v27 = vsel %vm572_vm8, %v722_v25, %v723_v26  ;;  %v712_v42 = vrot.slane %v710_v29, 4  ;;  %v759_v26 = vld [vmem:[%s3093_s1] sm:$0xf]  ;;  %s3083_s1 = smov 10  }
 0x11c   : > { %v726_v28 = vsel %vm725_vm10, %v719_v23, %v724_v27  ;;  %v905_v27 = vld [vmem:[%s3047_s5] ss:$2 sm:$0x3] }
 0x11d   : > { %728 = vst [vmem:[#allocation3 + $0x18] sm:$0xcc] %v726_v28  ;;  %v908_v28 = vperm.slane %v905_v27, 1 }
 0x11f   : > { %911 = vrot.lane.b32.xlu1 %v908_v28, %s3072_s26 }
 0x120   : > { %v749_v30 = vpop.permute.xlu0 %748 }
 0x121   : > { %v752_v32 = vrot.slane %v749_v30, 4 }
 0x122   : > { %v567_v35 = vpop.permute.xlu1 %566 }
 0x123   : > { %v754_v33 = vsel %vm572_vm8, %v752_v32, %v753_v31  ;;  %v570_v37 = vrot.slane %v567_v35, 4 }
 0x124   : > { %v756_v34 = vsel %vm755_vm11, %v749_v30, %v754_v33 }
 0x125   : > { %758 = vst [vmem:[#allocation3 + $0x20] sm:$0x33] %v756_v34  ;;  %v573_v38 = vsel %vm572_vm8, %v570_v37, %v571_v36 }
 0x126   : > { %v575_v39 = vsel %vm574_vm12, %v567_v35, %v573_v38  ;;  %v1015_v38 = vperm.slane %v2708_v54, 1 }
 0x127   : > { %577 = vst [vmem:[#allocation3] sm:$0xcc] %v575_v39  ;;  %v975_v39 = vperm.slane %v973_v0, 0 }
 0x128   : > { %v708_v40 = vpop.permute.xlu0 %707 }
 0x129   : > { %v711_v43 = vrot.slane %v708_v40, 4 }
 0x12a   : > { %v677_v49 = vpop.permute.xlu1 %676 }
 0x12b   : > { %v713_v45 = vsel %vm572_vm8, %v711_v43, %v712_v42  ;;  %v680_v51 = vrot.slane %v677_v49, 4  ;;  %v907_v43 = vperm.slane %v905_v27, 0 }
 0x12c   : > { %v715_v48 = vsel %vm714_vm13, %v708_v40, %v713_v45  ;;  %v764_v50 = vld [vmem:[#allocation3 + $0x20] sm:$0x33]  ;;  %v2265_v40 = vld [vmem:[%s3047_s5 + $0x1] ss:$2 sm:$0x3] }
 0x12d   : > { %717 = vst [vmem:[#allocation3 + $0x18] sm:$0x33] %v715_v48  ;;  %v784_v52 = vunpack.c.l.b16 %v764_v50  ;;  %v785_v53 = vunpack.c.h.b16 %v764_v50  ;;  %v682_v55 = vsel %vm572_vm8, %v680_v51, %v681_v47  ;;  %v946_v41 = vperm.slane %v2265_v40, 0  ;;  %v852_v47 = vld [vmem:[%s3047_s5] ss:$2 sm:$0x3] }
 0x12e   : > { %v684_v58 = vsel %vm683_vm14, %v677_v49, %v682_v55  ;;  %v2248_v20 = vld [vmem:[#allocation3] sm:$0xf]  ;;  %v2401_v22 = vld [vmem:[#allocation3 + $0x4] sm:$0xf]  ;;  %v947_v42 = vperm.slane %v2265_v40, 1  ;;  %v854_v48 = vperm.slane %v852_v47, 0 }
 0x12f   : > { %v790_v56 = vpack.c.b16 %v784_v52, %v784_v52  ;;  %v791_v57 = vpack.c.b16 %v785_v53, %v785_v53  ;;  %686 = vst [vmem:[#allocation3 + $0x10] sm:$0xcc] %v684_v58  ;;  %v855_v49 = vperm.slane %v852_v47, 1 }
 0x130   : > { %v600_v59 = vpop.permute.xlu0 %599 }
 0x131   : > { %v802_v61 = vsel %vm800_vm15, %v790_v56, 0  ;;  %v805_v62 = vsel %vm800_vm15, %v791_v57, 0  ;;  %v603_v1 = vrot.slane %v600_v59, 4  ;;  %vm796_vm15 = vcmask 293888  }
 0x132   : > { %812 = vmatpush.bf16.msra.mxu0 %v802_v61  ;;  %825 = vmatpush.bf16.msra.mxu1 %v805_v62  ;;  %v602_v63 = vpop.permute.xlu1 %601 }
 0x133   : > { %v604_v2 = vrot.slane %v602_v63, 4 }
 0x134   : > { %v2404_v5 = vld [vmem:[#allocation3 + $0x14] sm:$0xf0]  ;;  %v2258_v11 = vld [vmem:[#allocation3 + $0x18] sm:$0xf0] }
 0x135   : > { %v605_v4 = vsel %vm572_vm8, %v603_v1, %v604_v2 }
 0x136   : > { %v607_v7 = vsel %vm606_vm1, %v600_v59, %v605_v4  ;;  %v2256_v9 = vld [vmem:[#allocation3 + $0x10] sm:$0xf]  ;;  %v2403_v10 = vld [vmem:[#allocation3 + $0x14] sm:$0xf] }
 0x137   : > { %609 = vst [vmem:[#allocation3 + $0x8] sm:$0x33] %v607_v7  ;;  %v2257_v14 = vor.u32 %v2404_v5, %v2256_v9  ;;  %v2261_v15 = vor.u32 %v2403_v10, %v2258_v11 }
 0x138   : > { %v635_v8 = vpop.permute.xlu0 %634 }
 0x139   : > { %v637_v13 = vrot.slane %v635_v8, 4  ;;  %813 = vmatpush.bf16.msra.mxu0 %v2257_v14  ;;  %826 = vmatpush.bf16.msra.mxu1 %v2261_v15 }
 0x13a   : > { %v769_v29 = vpop.permute.xlu1 %768 }
 0x13b   : > { %v638_v16 = vsel %vm572_vm8, %v636_v12, %v637_v13 }
 0x13c   : > { %v640_v17 = vsel %vm639_vm3, %v633_v3, %v638_v16 }
 0x13d   : > { %642 = vst [vmem:[#allocation3 + $0x8] sm:$0xcc] %v640_v17 }
 0x142   : > { %v1017_v50 = vpop.permute.xlu1 %1016 }
 0x144   : > { %v2402_v21 = vld [vmem:[#allocation3 + $0x4] sm:$0xf0]  ;;  %v2250_v23 = vld [vmem:[#allocation3 + $0x8] sm:$0xf0] }
 0x145   : > { %v2249_v24 = vor.u32 %v2402_v21, %v2248_v20  ;;  %v2253_v25 = vor.u32 %v2401_v22, %v2250_v23 }
 0x147   : > { %814 = vmatpush.bf16.msra.mxu0 %v2249_v24  ;;  %827 = vmatpush.bf16.msra.mxu1 %v2253_v25 }
 0x14a   : > { %2262 = vmatmul.msk.bf16.vlgmr.msra.gmra.mxu0 %vm796_vm15, %v759_v26  ;;  %2263 = vmatmul.msk.bf16.vlgmr.msra.gmra.mxu1 %vm796_vm15, %v759_v26  ;;  %vm845_vm15 = vcmask 1047688   ;;  %v980_v61 = vpop.permute.xlu1 %979 }
 0x188   : > { %v881_v9 = vpop.permute.xlu1 %880 }
 0x191   : > { %v912_v20 = vpop.permute.xlu1 %911 }
 0x1c7   : > { %v816_v30 = vpop.f32.mrf.mxu0  ;;  %v829_v31 = vpop.f32.mrf.mxu1 }
 0x1c8   : > { %v817_v32 = vadd.f32 %v816_v30, %v769_v29  ;;  %v830_v33 = vadd.f32 %v829_v31, %v769_v29 }
 0x1ca   : > { %v833_v34 = vmax.f32 %v817_v32, 0.0  ;;  %v834_v35 = vmax.f32 %v830_v33, 0.0 }
 0x1cc   : > { %837 = vrot.lane.b32.xlu2 %v833_v34, %s3080_s17  ;;  %839 = vrot.lane.b32.xlu0 %v834_v35, %s3080_s17 }
 0x1cf   : > { %v831_v36 = vpop.f32.mrf.mxu1  ;;  %v818_v37 = vpop.f32.mrf.mxu0 }
 0x1d4   : > { %1018 = vrot.lane.b32.xlu2 %v1015_v38, %s2494_s22  ;;  %977 = vrot.lane.b32.xlu0 %v975_v39, %s2497_s23  ;;  %s3098_s22 = smov 127  }
 0x1dc   : > { %948 = vrot.lane.b32.xlu2 %v946_v41, %s3074_s29  ;;  %950 = vrot.lane.b32.xlu0 %v947_v42, %s3074_s29 }
 0x1e4   : > { %909 = vrot.lane.b32.xlu0 %v907_v43, %s3072_s26  ;;  %882 = vrot.lane.b32.xlu2 %v879_v44, %s3070_s27  ;;  %s2517_s26 = smov 57   ;;  %s3088_s27 = smov 118  }
 0x226   : > { %v838_v45 = vpop.permute.xlu2 %837 }
 0x227   : > { %846 = vst.msk [vmem:[#allocation2] sm:$0xff] %vm845_vm15, %v838_v45  ;;  %vm1456_vm15 = vcmask 519168  }
 0x22e   : > { %v1019_v46 = vpop.permute.xlu2 %1018  ;;  %v849_v51 = vld [vmem:[#allocation2] sm:$0xff] }
 0x22f   : > { %v858_v54 = vmul.f32 %v854_v48, %v849_v51  ;;  %v1020_v1 = vsel %vm523_vm0, %v1017_v50, %v1019_v46  ;;  %v1024_v7 = vmul.f32 %v1017_v50, %v849_v51  ;;  %v888_v25 = vmul.f32 %v881_v9, %v849_v51 }
 0x230   : > { %vm1102_vm0 = vcmask 588800  }
 0x236   : > { %v949_v57 = vpop.permute.xlu2 %948 }
 0x237   : > { %v956_v26 = vmul.f32 %v949_v57, %v849_v51 }
 0x23e   : > { %v840_v52 = vpop.permute.xlu0 %839  ;;  %v883_v2 = vpop.permute.xlu2 %882 }
 0x23f   : > { %v841_v53 = vsel %vm537_vm2, %v838_v45, %v840_v52  ;;  %848 = vst.msk [vmem:[#allocation2 + $0x10] sm:$0xff] %vm537_vm2, %v840_v52  ;;  %v884_v18 = vsel %vm587_vm7, %v881_v9, %v883_v2  ;;  %vm1166_vm2 = vcmask 1046528   ;;  %vm1445_vm7 = vcmask 72704  }
 0x240   : > { %847 = vst [vmem:[#allocation2 + $0x8] sm:$0xff] %v841_v53  ;;  %v859_v55 = vmul.f32 %v855_v49, %v841_v53  ;;  %v862_v56 = vpack.c.bf16 %v841_v53, %v849_v51  ;;  %v1025_v5 = vmul.f32 %v1020_v1, %v841_v53  ;;  %v889_v23 = vmul.f32 %v884_v18, %v841_v53  ;;  %v1051_v1 = vld [vmem:[%s3046_s4] sm:$0xff] }
 0x242   : > { %v860_v58 = vpack.c.bf16 %v859_v55, %v858_v54  ;;  %934 = vrot.lane.b32.xlu2 %v862_v56, %s3068_s16  ;;  %v1027_v10 = vpack.c.bf16 %v1025_v5, %v1024_v7  ;;  %v891_v29 = vpack.c.bf16 %v889_v23, %v888_v25 }
 0x244   : > { %861 = vst [vmem:[#allocation3] sm:$0xff] %v860_v58 }
 0x246   : > { %v851_v59 = vld [vmem:[#allocation2 + $0x10] sm:$0xff]  ;;  %v978_v60 = vpop.permute.xlu0 %977 }
 0x247   : > { %v863_v62 = vpack.c.bf16 %v851_v59, %v851_v59  ;;  %v987_v63 = vmul.f32 %v980_v61, %v851_v59  ;;  %v890_v3 = vmul.f32 %v883_v2, %v851_v59  ;;  %v981_v8 = vsel %vm695_vm5, %v978_v60, %v980_v61 }
 0x248   : > { %v985_v11 = vmul.f32 %v978_v60, %v849_v51  ;;  %v986_v12 = vmul.f32 %v981_v8, %v841_v53  ;;  %v1026_v13 = vmul.f32 %v1019_v46, %v851_v59  ;;  %v919_v32 = vmul.f32 %v912_v20, %v851_v59 }
 0x249   : > { %936 = vrot.lane.b32.xlu0 %v863_v62, %s3068_s16  ;;  %1004 = vrot.lane.b32.xlu1 %v863_v62, %s2503_s21  ;;  %v989_v0 = vpack.c.bf16 %v987_v63, %v987_v63  ;;  %v892_v6 = vpack.c.bf16 %v890_v3, %v890_v3  ;;  %s2798_s16 = sshll.u32 %s3112_s19, 4  ;;  %s2510_s19 = smov 64   ;;  %vm1194_vm5 = vcmask 138312  }
 0x24a   : > { %v988_v15 = vpack.c.bf16 %v986_v12, %v985_v11  ;;  %v1028_v17 = vpack.c.bf16 %v1026_v13, %v1026_v13  ;;  %v921_v33 = vpack.c.bf16 %v919_v32, %v919_v32  ;;  %s514_s29 = scalar_lea.vmem %s3056_s14, %s2798_s16 }
 0x24b   : > { %994 = vrot.lane.b32.xlu2 %v989_v0, %s3076_s25 }
 0x24e   : > { %v951_v4 = vpop.permute.xlu0 %950 }
 0x24f   : > { %v958_v14 = vmul.f32 %v951_v4, %v851_v59  ;;  %v952_v19 = vsel %vm662_vm4, %v949_v57, %v951_v4  ;;  %vm1162_vm4 = vcmask 121856  }
 0x250   : > { %v957_v24 = vmul.f32 %v952_v19, %v841_v53 }
 0x251   : > { %897 = vrot.lane.b32.xlu1 %v892_v6, %s3094_s20  ;;  %1002 = vrot.lane.b32.xlu0 %v862_v56, %s2503_s21  ;;  %v960_v21 = vpack.c.bf16 %v958_v14, %v958_v14  ;;  %s3096_s21 = smov 110  }
 0x252   : > { %v959_v30 = vpack.c.bf16 %v957_v24, %v956_v26 }
 0x253   : > { %1031 = vrot.lane.b32.xlu2 %v1027_v10, %s3095_s30 }
 0x256   : > { %v910_v16 = vpop.permute.xlu0 %909 }
 0x257   : > { %v913_v22 = vsel %vm618_vm6, %v910_v16, %v912_v20  ;;  %v917_v27 = vmul.f32 %v910_v16, %v849_v51 }
 0x258   : > { %v918_v28 = vmul.f32 %v913_v22, %v841_v53 }
 0x259   : > { %1033 = vrot.lane.b32.xlu0 %v1028_v17, %s3095_s30  ;;  %992 = vrot.lane.b32.xlu1 %v988_v15, %s3076_s25  ;;  %s2511_s30 = smov 41  }
 0x25a   : > { %v920_v31 = vpack.c.bf16 %v918_v28, %v917_v27 }
 0x25b   : > { %965 = vrot.lane.b32.xlu2 %v960_v21, %s3096_s21 }
 0x261   : > { %895 = vrot.lane.b32.xlu0 %v891_v29, %s3094_s20  ;;  %963 = vrot.lane.b32.xlu1 %v959_v30, %s3096_s21 }
 0x263   : > { %924 = vrot.lane.b32.xlu2 %v920_v31, %s3097_s28 }
 0x269   : > { %926 = vrot.lane.b32.xlu0 %v921_v33, %s3097_s28  ;;  %866 = vrot.lane.b32.xlu1 %v862_v56, %s3098_s22 }
 0x26b   : > { %868 = vrot.lane.b32.xlu2 %v863_v62, %s3098_s22 }
 0x271   : > { %1054 = vperm.xlu0 %2471, %v1051_v1   ;;  %v1306_v1 = vld [vmem:[%s3048_s6] sm:$0xff] }
 0x29c   : > { %v935_v34 = vpop.permute.xlu2 %934 }
 0x29d   : > { %v938_v39 = vrot.slane %v935_v34, 4 }
 0x2a5   : > { %v995_v35 = vpop.permute.xlu2 %994 }
 0x2a6   : > { %v997_v52 = vrot.slane %v995_v35, 4 }
 0x2ad   : > { %v1032_v36 = vpop.permute.xlu2 %1031 }
 0x2ae   : > { %v1035_v53 = vrot.slane %v1032_v36, 4 }
 0x2b5   : > { %v966_v47 = vpop.permute.xlu2 %965 }
 0x2b6   : > { %v968_v2 = vrot.slane %v966_v47, 4 }
 0x2bb   : > { %v1005_v37 = vpop.permute.xlu1 %1004  ;;  %v937_v38 = vpop.permute.xlu0 %936 }
 0x2bc   : > { %v939_v40 = vrot.slane %v937_v38, 4  ;;  %v1007_v45 = vrot.slane %v1005_v37, 4 }
 0x2bd   : > { %v925_v58 = vpop.permute.xlu2 %924 }
 0x2be   : > { %v940_v41 = vsel %vm572_vm8, %v938_v39, %v939_v40  ;;  %v928_v23 = vrot.slane %v925_v58, 4 }
 0x2bf   : > { %v941_v42 = vsel %vm650_vm9, %v935_v34, %v940_v41  ;;  %vm1448_vm9 = vcmask 671304  }
 0x2c0   : > { %943 = vst [vmem:[#allocation3 + $0x20] sm:$0xff] %v941_v42 }
 0x2c3   : > { %v898_v43 = vpop.permute.xlu1 %897  ;;  %v1003_v44 = vpop.permute.xlu0 %1002 }
 0x2c4   : > { %v1006_v46 = vrot.slane %v1003_v44, 4  ;;  %v900_v3 = vrot.slane %v898_v43, 4 }
 0x2c5   : > { %v869_v20 = vpop.permute.xlu2 %868 }
 0x2c6   : > { %v1008_v48 = vsel %vm572_vm8, %v1006_v46, %v1007_v45  ;;  %v871_v24 = vrot.slane %v869_v20, 4  ;;  %v2269_v45 = vld [vmem:[#allocation3] sm:$0xf]  ;;  %v2405_v46 = vld [vmem:[#allocation3 + $0x4] sm:$0xf] }
 0x2c7   : > { %v1009_v49 = vsel %vm725_vm10, %v1003_v44, %v1008_v48  ;;  %v2285_v29 = vld [vmem:[#allocation3 + $0x20] sm:$0xf]  ;;  %v2409_v33 = vld [vmem:[#allocation3 + $0x24] sm:$0xf]  ;;  %vm1229_vm10 = vcmask 203912  }
 0x2c8   : > { %1011 = vst [vmem:[#allocation3 + $0x38] sm:$0xff] %v1009_v49  ;;  %v1041_v49 = vld [vmem:[%s3045_s3] sm:$0xf] }
 0x2cb   : > { %v993_v50 = vpop.permute.xlu1 %992  ;;  %v1034_v51 = vpop.permute.xlu0 %1033 }
 0x2cc   : > { %v996_v54 = vrot.slane %v993_v50, 4  ;;  %v1036_v55 = vrot.slane %v1034_v51, 4 }
 0x2ce   : > { %v998_v56 = vsel %vm572_vm8, %v996_v54, %v997_v52  ;;  %v1037_v57 = vsel %vm572_vm8, %v1035_v53, %v1036_v55 }
 0x2cf   : > { %v999_v59 = vsel %vm714_vm13, %v993_v50, %v998_v56  ;;  %v1038_v60 = vsel %vm755_vm11, %v1032_v36, %v1037_v57  ;;  %v2412_v12 = vld [vmem:[#allocation3 + $0x34] sm:$0xf0]  ;;  %v2295_v17 = vld [vmem:[#allocation3 + $0x38] sm:$0xf0]  ;;  %vm1264_vm11 = vcmask 269512   ;;  %vm1338_vm13 = vcmask 400712  }
 0x2d0   : > { %1001 = vst [vmem:[#allocation3 + $0x30] sm:$0xff] %v999_v59  ;;  %v1082_v61 = vunpack.c.l.b16 %v1038_v60  ;;  %v1083_v62 = vunpack.c.h.b16 %v1038_v60  ;;  %v1307_v59 = vld [vmem:[%s3048_s6 + $0x8] sm:$0x7f] }
 0x2d1   : > { %1040 = vst [vmem:[#allocation3 + $0x40] sm:$0xff] %v1038_v60 }
 0x2d2   : > { %v1092_v63 = vpack.c.b16 %v1082_v61, %v1082_v61  ;;  %v1093_v0 = vpack.c.b16 %v1083_v62, %v1083_v62 }
 0x2d3   : > { %v964_v4 = vpop.permute.xlu1 %963  ;;  %v896_v5 = vpop.permute.xlu0 %895 }
 0x2d4   : > { %v967_v6 = vrot.slane %v964_v4, 4  ;;  %v899_v7 = vrot.slane %v896_v5, 4  ;;  %v1108_v8 = vsel %vm572_vm8, %v1092_v63, 0  ;;  %v1111_v9 = vsel %vm572_vm8, %v1093_v0, 0 }
 0x2d5   : > { %1116 = vmatpush.bf16.msra.mxu2 %v1108_v8  ;;  %1129 = vmatpush.bf16.msra.mxu3 %v1111_v9  ;;  %v1232_v8 = vld [vmem:[%s3048_s6 + $0x8] sm:$0x7f] }
 0x2d6   : > { %v969_v10 = vsel %vm572_vm8, %v967_v6, %v968_v2  ;;  %v901_v11 = vsel %vm572_vm8, %v899_v7, %v900_v3  ;;  %v1161_v2 = vld [vmem:[%s3048_s6 + $0x8] sm:$0x7f] }
 0x2d7   : > { %v970_v13 = vsel %vm683_vm14, %v964_v4, %v969_v10  ;;  %v902_v14 = vsel %vm606_vm1, %v896_v5, %v901_v11  ;;  %v2293_v15 = vld [vmem:[#allocation3 + $0x30] sm:$0xf]  ;;  %v2411_v16 = vld [vmem:[#allocation3 + $0x34] sm:$0xf]  ;;  %2301 = vmatpush.msk.msrb.mxu0 %vm1166_vm2, %v1161_v2  ;;  %vm1373_vm14 = vcmask 466312   ;;  %vm1408_vm1 = vcmask 531912  }
 0x2d8   : > { %972 = vst [vmem:[#allocation3 + $0x28] sm:$0xff] %v970_v13  ;;  %v2294_v18 = vor.u32 %v2412_v12, %v2293_v15  ;;  %v2298_v19 = vor.u32 %v2411_v16, %v2295_v17  ;;  %v1197_v7 = vld [vmem:[%s3048_s6 + $0x8] sm:$0x7f] }
 0x2d9   : > { %904 = vst [vmem:[#allocation3 + $0x10] sm:$0xff] %v902_v14  ;;  %1185 = vmatpush.msrb.mxu0 %v1306_v1  ;;  %2303 = vmatpush.msk.msrb.mxu1 %vm1166_vm2, %v1197_v7  ;;  %v1267_v10 = vld [vmem:[%s3048_s6 + $0x8] sm:$0x7f] }
 0x2da   : > { %1117 = vmatpush.bf16.msra.mxu2 %v2294_v18  ;;  %1130 = vmatpush.bf16.msra.mxu3 %v2298_v19  ;;  %v1341_v11 = vld [vmem:[%s3048_s6 + $0x8] sm:$0x7f] }
 0x2db   : > { %v867_v21 = vpop.permute.xlu1 %866  ;;  %v927_v22 = vpop.permute.xlu0 %926  ;;  %2305 = vmatpush.msk.msra.mxu0 %vm1166_vm2, %v1232_v8  ;;  %1220 = vmatpush.msrb.mxu1 %v1306_v1  ;;  %v1376_v12 = vld [vmem:[%s3048_s6 + $0x8] sm:$0x7f]  ;;  %v2480_v8 = vld [vmem:[%s3053_s11 + $0x1] ss:$0 sm:$0xff] }
 0x2dc   : > { %v870_v25 = vrot.slane %v867_v21, 4  ;;  %v929_v26 = vrot.slane %v927_v22, 4  ;;  %v1411_v14 = vld [vmem:[%s3048_s6 + $0x8] sm:$0x7f] }
 0x2dd   : > { %1255 = vmatpush.msra.mxu0 %v1306_v1  ;;  %2307 = vmatpush.msk.msra.mxu1 %vm1166_vm2, %v1267_v10 }
 0x2de   : > { %v872_v27 = vsel %vm572_vm8, %v870_v25, %v871_v24  ;;  %v930_v28 = vsel %vm572_vm8, %v928_v23, %v929_v26 }
 0x2df   : > { %v873_v30 = vsel %vm574_vm12, %v867_v21, %v872_v27  ;;  %v931_v31 = vsel %vm639_vm3, %v925_v58, %v930_v28  ;;  %v2410_v32 = vld [vmem:[#allocation3 + $0x24] sm:$0xf0]  ;;  %v2287_v34 = vld [vmem:[#allocation3 + $0x28] sm:$0xf0]  ;;  %1290 = vmatpush.msra.mxu1 %v1306_v1  ;;  %vm1299_vm12 = vcmask 335112  }
 0x2e0   : > { %875 = vst [vmem:[#allocation3 + $0x8] sm:$0xff] %v873_v30  ;;  %v2286_v35 = vor.u32 %v2410_v32, %v2285_v29  ;;  %v2290_v36 = vor.u32 %v2409_v33, %v2287_v34  ;;  %v2277_v37 = vld [vmem:[#allocation3 + $0x10] sm:$0xf]  ;;  %v2407_v39 = vld [vmem:[#allocation3 + $0x14] sm:$0xf] }
 0x2e1   : > { %933 = vst [vmem:[#allocation3 + $0x18] sm:$0xff] %v931_v31  ;;  %v2475_v28 = vld [vmem:[%s3053_s11 + $0x1] ss:$0 sm:$0xff]  ;;  %v2473_v29 = vld [vmem:[%s3053_s11] ss:$0 sm:$0xff]  ;;  %v2485_v33 = vld [vmem:[#allocation2 + $0x20] sm:$0xff] }
 0x2e2   : > { %1118 = vmatpush.bf16.msra.mxu2 %v2286_v35  ;;  %1131 = vmatpush.bf16.msra.mxu3 %v2290_v36  ;;  %v2477_v30 = vld [vmem:[%s3053_s11 + $0x1] ss:$0 sm:$0xff]  ;;  %v2474_v32 = vld [vmem:[%s3053_s11] ss:$0 sm:$0xff]  ;;  %1447 = vst.msk [vmem:[#allocation2 + $0x18] sm:$0xff] %vm1445_vm7, %v2485_v33 }
 0x2e3   : > { %v1055_v50 = vpop.permute.xlu0 %1054  ;;  %v2476_v31 = vld [vmem:[%s3053_s11 + $0x1] ss:$0 sm:$0xff]  ;;  %1450 = vst.msk [vmem:[#allocation2 + $0x18] sm:$0xff] %vm1448_vm9, %v2485_v33 }
 0x2e7   : > { %v2406_v43 = vld [vmem:[#allocation3 + $0x4] sm:$0xf0]  ;;  %v2271_v44 = vld [vmem:[#allocation3 + $0x8] sm:$0xf0] }
 0x2e8   : > { %v2408_v38 = vld [vmem:[#allocation3 + $0x14] sm:$0xf0]  ;;  %v2279_v40 = vld [vmem:[#allocation3 + $0x18] sm:$0xf0]  ;;  %v2270_v47 = vor.u32 %v2406_v43, %v2269_v45  ;;  %v2274_v48 = vor.u32 %v2405_v46, %v2271_v44 }
 0x2e9   : > { %v2278_v41 = vor.u32 %v2408_v38, %v2277_v37  ;;  %v2282_v42 = vor.u32 %v2407_v39, %v2279_v40 }
 0x2eb   : > { %1119 = vmatpush.bf16.msra.mxu2 %v2278_v41  ;;  %1132 = vmatpush.bf16.msra.mxu3 %v2282_v42  ;;  %v2478_v42 = vld [vmem:[%s3053_s11] ss:$0 sm:$0xff] }
 0x2ef   : > { %1120 = vmatpush.bf16.msra.mxu2 %v2270_v47  ;;  %1133 = vmatpush.bf16.msra.mxu3 %v2274_v48 }
 0x2f2   : > { %2299 = vmatmul.msk.bf16.vlgmr.msra.gmra.mxu2 %vm1102_vm0, %v1041_v49  ;;  %2300 = vmatmul.msk.bf16.vlgmr.msra.gmra.mxu3 %vm1102_vm0, %v1041_v49 }
 0x2f3   : > { %2309 = vmatpush.msk.msrb.mxu2 %vm1166_vm2, %v1307_v59  ;;  %2311 = vmatpush.msk.msrb.mxu3 %vm1166_vm2, %v1341_v11 }
 0x2f5   : > { %1329 = vmatpush.msrb.mxu2 %v1306_v1  ;;  %1364 = vmatpush.msrb.mxu3 %v1306_v1 }
 0x375   : > { %v1122_v51 = vpop.f32.mrf.mxu2  ;;  %v1135_v52 = vpop.f32.mrf.mxu3 }
 0x376   : > { %v1123_v53 = vadd.f32 %v1122_v51, %v1055_v50  ;;  %v1136_v54 = vadd.f32 %v1135_v52, %v1055_v50 }
 0x378   : > { %v1139_v55 = vmax.f32 %v1123_v53, 0.0  ;;  %v1140_v56 = vmax.f32 %v1136_v54, 0.0 }
 0x37a   : > { %1147 = vrot.lane.b32.xlu2 %v1140_v56, %s3097_s28  ;;  %1145 = vrot.lane.b32.xlu1 %v1139_v55, %s3097_s28  ;;  %1142 = vst [vmem:[%s514_s29 + $0x8] sm:$0xff] %v1140_v56 }
 0x37b   : > { %1141 = vst [vmem:[%s514_s29] sm:$0xff] %v1139_v55  ;;  %s2516_s29 = smov 65  }
 0x37d   : > { %v1124_v57 = vpop.f32.mrf.mxu2  ;;  %v1137_v58 = vpop.f32.mrf.mxu3 }
 0x3d4   : > { %v1148_v60 = vpop.permute.xlu2 %1147 }
 0x3d5   : > { %v1154_v61 = vmax.f32 %v1140_v56, %v1148_v60 }
 0x3d7   : > { %1302 = vrot.lane.b32.xlu2 %v1154_v61, %s3098_s22 }
 0x3ec   : > { %v1146_v62 = vpop.permute.xlu1 %1145 }
 0x3ed   : > { %v1150_v63 = vsel %vm639_vm3, %v1146_v62, %v1148_v60  ;;  %vm1443_vm3 = vcmask 597512   ;;  %v1548_v60 = vld [vmem:[%s3050_s8] sm:$0xff]  ;;  %v1549_v62 = vld [vmem:[%s3050_s8 + $0x8] sm:$0xff] }
 0x3ee   : > { %v1153_v0 = vmax.f32 %v1139_v55, %v1150_v63 }
 0x3f0   : > { %1156 = vrot.lane.b32.xlu1 %v1153_v0, %s3098_s22 }
 0x431   : > { %v1303_v3 = vpop.permute.xlu2 %1302 }
 0x432   : > { %v1305_v4 = vmax.f32 %v1154_v61, %v1303_v3 }
 0x434   : > { %2310 = vmatmul.msk.f32.vlgmr.msrb.gmra.mxu2 %vm1162_vm4, %v1305_v4 }
 0x462   : > { %v1157_v5 = vpop.permute.xlu1 %1156 }
 0x463   : > { %v1159_v6 = vmax.f32 %v1153_v0, %v1157_v5 }
 0x465   : > { %1268 = vrot.lane.b32.xlu2 %v1159_v6, %s2497_s23  ;;  %1233 = vrot.lane.b32.xlu1 %v1159_v6, %s2510_s19 }
 0x466   : > { %1198 = vrot.lane.b32.xlu0 %v1159_v6, %s3076_s25  ;;  %2302 = vmatmul.msk.f32.vlgmr.msrb.gmra.mxu0 %vm1162_vm4, %v1159_v6 }
 0x467   : > { %2313 = vmatpush.msk.msrb.mxu0 %vm1166_vm2, %v1376_v12 }
 0x469   : > { %1399 = vmatpush.msrb.mxu0 %v1306_v1 }
 0x46d   : > { %1412 = vrot.lane.b32.xlu2 %v1305_v4, %s2497_s23  ;;  %1377 = vrot.lane.b32.xlu1 %v1305_v4, %s2510_s19  ;;  %s2513_s23 = smov 25   ;;  %s2514_s19 = smov 33  }
 0x46e   : > { %1342 = vrot.lane.b32.xlu0 %v1305_v4, %s3076_s25  ;;  %s3078_s25 = smov 9   ;;  %v2479_v4 = vld [vmem:[%s3053_s11] ss:$0 sm:$0xff] }
 0x4b7   : > { %v1331_v9 = vpop.f32.mrf.mxu2 }
 0x4b8   : > { %1335 = vrot.lane.b32.xlu1 %v1331_v9, %s2511_s30  ;;  %s3103_s30 = smov 9  }
 0x4bf   : > { %v1269_v16 = vpop.permute.xlu2 %1268 }
 0x4c7   : > { %v1413_v20 = vpop.permute.xlu2 %1412 }
 0x4d7   : > { %v1234_v13 = vpop.permute.xlu1 %1233 }
 0x4d8   : > { %v1199_v15 = vpop.permute.xlu0 %1198  ;;  %2306 = vmatmul.msk.f32.vlgmr.msra.gmra.mxu0 %vm1162_vm4, %v1234_v13 }
 0x4d9   : > { %2304 = vmatmul.msk.f32.vlgmr.msrb.gmra.mxu1 %vm1162_vm4, %v1199_v15 }
 0x4da   : > { %2315 = vmatpush.msk.msrb.mxu1 %vm1166_vm2, %v1411_v14 }
 0x4dc   : > { %1434 = vmatpush.msrb.mxu1 %v1306_v1 }
 0x4df   : > { %v1378_v17 = vpop.permute.xlu1 %1377 }
 0x4e0   : > { %v1343_v18 = vpop.permute.xlu0 %1342  ;;  %2314 = vmatmul.msk.f32.vlgmr.msrb.gmra.mxu0 %vm1162_vm4, %v1378_v17 }
 0x4e1   : > { %2308 = vmatmul.msk.f32.vlgmr.msra.gmra.mxu1 %vm1162_vm4, %v1269_v16  ;;  %2312 = vmatmul.msk.f32.vlgmr.msrb.gmra.mxu3 %vm1162_vm4, %v1343_v18 }
 0x4e3   : > { %v1187_v19 = vpop.f32.mrf.mxu0 }
 0x4e4   : > { %1191 = vrot.lane.b32.xlu0 %v1187_v19, %s3078_s25  ;;  %s3101_s25 = smov 2  }
 0x4e9   : > { %2316 = vmatmul.msk.f32.vlgmr.msrb.gmra.mxu1 %vm1162_vm4, %v1413_v20  ;;  %vm1915_vm4 = vcmask 56320  }
 0x52a   : > { %v1336_v34 = vpop.permute.xlu1 %1335 }
 0x555   : > { %v1257_v21 = vpop.f32.mrf.mxu0 }
 0x556   : > { %v1222_v22 = vpop.f32.mrf.mxu1  ;;  %v1192_v23 = vpop.permute.xlu0 %1191  ;;  %1261 = vrot.lane.b32.xlu2 %v1257_v21, %s2513_s23  ;;  %s3082_s23 = smov 8  }
 0x557   : > { %1195 = vst.msk [vmem:[#allocation2] sm:$0xff] %vm1194_vm5, %v1192_v23  ;;  %1226 = vrot.lane.b32.xlu1 %v1222_v22, %s3080_s17  ;;  %s3084_s17 = smov 120   ;;  %vm2002_vm5 = vcmask 105544  }
 0x55d   : > { %v1401_v26 = vpop.f32.mrf.mxu0 }
 0x55e   : > { %v1292_v24 = vpop.f32.mrf.mxu1 }
 0x55f   : > { %1296 = vrot.lane.b32.xlu0 %v1292_v24, %s2514_s19  ;;  %s3099_s19 = smov 18  }
 0x564   : > { %v1366_v25 = vpop.f32.mrf.mxu3 }
 0x565   : > { %1370 = vrot.lane.b32.xlu2 %v1366_v25, %s2515_s24  ;;  %s3100_s24 = smov 16   ;;  %v2413_v25 = vld [vmem:[%s3049_s7] sm:$0xff] }
 0x566   : > { %v1436_v27 = vpop.f32.mrf.mxu1 }
 0x567   : > { %1440 = vrot.lane.b32.xlu1 %v1436_v27, %s2516_s29  ;;  %1405 = vrot.lane.b32.xlu0 %v1401_v26, %s2517_s26  ;;  %s3102_s29 = smov 111   ;;  %s3086_s26 = smov 119  }
 0x56d   : > { %1527 = vrot.lane.b32.xlu2 %v2475_v28, %s3099_s19 }
 0x56f   : > { %1510 = vrot.lane.b32.xlu0 %v2473_v29, %s3100_s24  ;;  %1497 = vrot.lane.b32.xlu1 %v2477_v30, %s3083_s1 }
 0x575   : > { %1467 = vrot.lane.b32.xlu2 %v2476_v31, %s3101_s25 }
 0x577   : > { %1480 = vrot.lane.b32.xlu0 %v2474_v32, %s3082_s23  ;;  %s3104_s23 = smov 10  }
 0x5b0   : > { %v1262_v36 = vpop.permute.xlu2 %1261 }
 0x5bf   : > { %v1371_v38 = vpop.permute.xlu2 %1370 }
 0x5c7   : > { %v1528_v41 = vpop.permute.xlu2 %1527 }
 0x5c9   : > { %v1227_v35 = vpop.permute.xlu1 %1226 }
 0x5ca   : > { %1230 = vst.msk [vmem:[#allocation2] sm:$0xff] %vm1229_vm10, %v1227_v35  ;;  %v2482_v35 = vld [vmem:[%s3053_s11] ss:$0 sm:$0xff] }
 0x5cb   : > { %1265 = vst.msk [vmem:[#allocation2] sm:$0xff] %vm1264_vm11, %v1262_v36  ;;  %v2483_v36 = vld [vmem:[%s3053_s11 + $0x1] ss:$0 sm:$0xff] }
 0x5cf   : > { %v1468_v45 = vpop.permute.xlu2 %1467 }
 0x5d1   : > { %v1297_v37 = vpop.permute.xlu0 %1296 }
 0x5d2   : > { %1300 = vst.msk [vmem:[#allocation2] sm:$0xff] %vm1299_vm12, %v1297_v37 }
 0x5d3   : > { %1339 = vst.msk [vmem:[#allocation2] sm:$0xff] %vm1338_vm13, %v1336_v34 }
 0x5d4   : > { %1374 = vst.msk [vmem:[#allocation2] sm:$0xff] %vm1373_vm14, %v1371_v38  ;;  %v2484_v38 = vld [vmem:[%s3053_s11] ss:$0 sm:$0xff] }
 0x5d9   : > { %v1441_v39 = vpop.permute.xlu1 %1440  ;;  %v1406_v40 = vpop.permute.xlu0 %1405 }
 0x5da   : > { %1409 = vst.msk [vmem:[#allocation2] sm:$0xff] %vm1408_vm1, %v1406_v40 }
 0x5db   : > { %1444 = vst.msk [vmem:[#allocation2] sm:$0xff] %vm1443_vm3, %v1441_v39 }
 0x5dc   : > { %1446 = vst.msk [vmem:[#allocation2] sm:$0xff] %vm1445_vm7, %v2485_v33  ;;  %vm2048_vm7 = vcmask 138344  }
 0x5dd   : > { %1449 = vst.msk [vmem:[#allocation2] sm:$0xff] %vm1448_vm9, %v2485_v33  ;;  %v2481_v33 = vld [vmem:[%s3053_s11 + $0x1] ss:$0 sm:$0xff]  ;;  %vm2094_vm9 = vcmask 171144  }
 0x5e1   : > { %v1511_v43 = vpop.permute.xlu0 %1510  ;;  %v1498_v53 = vpop.permute.xlu1 %1497 }
 0x5e4   : > { %v1451_v44 = vld [vmem:[#allocation2] sm:$0xff] }
 0x5e5   : > { %v1454_v46 = vmul.f32 %v2478_v42, %v1451_v44  ;;  %v1530_v47 = vmul.f32 %v1528_v41, %v1451_v44  ;;  %v1458_v48 = vpack.c.bf16 %v1451_v44, %v1451_v44  ;;  %v1513_v49 = vmul.f32 %v1511_v43, %v1451_v44 }
 0x5e6   : > { %v1470_v52 = vmul.f32 %v1468_v45, %v1451_v44  ;;  %v1500_v55 = vmul.f32 %v1498_v53, %v1451_v44 }
 0x5e7   : > { %v1455_v50 = vpack.c.bf16 %v1454_v46, %v1454_v46  ;;  %v1531_v51 = vpack.c.bf16 %v1530_v47, %v1530_v47  ;;  %1520 = vrot.lane.b32.xlu0 %v1458_v48, %s3102_s29  ;;  %v1514_v54 = vpack.c.bf16 %v1513_v49, %v1513_v49 }
 0x5e8   : > { %v1471_v56 = vpack.c.bf16 %v1470_v52, %v1470_v52  ;;  %v1501_v58 = vpack.c.bf16 %v1500_v55, %v1500_v55 }
 0x5e9   : > { %1533 = vrot.lane.b32.xlu1 %v1531_v51, %s3096_s21  ;;  %1457 = vst.msk [vmem:[#allocation3] sm:$0xf] %vm1456_vm15, %v1455_v50  ;;  %1516 = vrot.lane.b32.xlu2 %v1514_v54, %s3097_s28  ;;  %v1481_v57 = vpop.permute.xlu0 %1480 }
 0x5ea   : > { %v1483_v59 = vmul.f32 %v1481_v57, %v1451_v44 }
 0x5ec   : > { %v1484_v61 = vpack.c.bf16 %v1483_v59, %v1483_v59 }
 0x5ef   : > { %1473 = vrot.lane.b32.xlu0 %v1471_v56, %s3094_s20 }
 0x5f0   : > { %v2323_v21 = vld [vmem:[#allocation3] sm:$0xf] }
 0x5f1   : > { %1490 = vrot.lane.b32.xlu1 %v1458_v48, %s3086_s26  ;;  %1503 = vrot.lane.b32.xlu2 %v1501_v58, %s3088_s27  ;;  %s3105_s27 = smov 8   ;;  %s3107_s26 = smov 119  }
 0x5f7   : > { %1552 = vperm.xlu0 %2471, %v1548_v60  }
 0x5f9   : > { %1486 = vrot.lane.b32.xlu1 %v1484_v61, %s3084_s17  ;;  %1460 = vrot.lane.b32.xlu2 %v1458_v48, %s3098_s22  ;;  %s2525_s17 = smov 13  }
 0x601   : > { %1557 = vperm.xlu1 %2470, %v1549_v62  }
 0x609   : > { %1718 = vrot.lane.b32.xlu1 %v2479_v4, %s3100_s24  ;;  %s509_s24 = scalar_lea.vmem %s3055_s13, %s2798_s16 }
 0x611   : > { %1650 = vrot.lane.b32.xlu1 %v2480_v8, %s3101_s25  ;;  %s3109_s25 = smov 96  }
 0x643   : > { %v1517_v63 = vpop.permute.xlu2 %1516 }
 0x644   : > { %1519 = vst.msk [vmem:[#allocation3 + $0x30] sm:$0xf] %vm1456_vm15, %v1517_v63 }
 0x64b   : > { %v1504_v0 = vpop.permute.xlu2 %1503  ;;  %v2335_v13 = vld [vmem:[#allocation3 + $0x30] sm:$0xf] }
 0x64c   : > { %1506 = vst.msk [vmem:[#allocation3 + $0x28] sm:$0xf] %vm1456_vm15, %v1504_v0 }
 0x653   : > { %v1461_v1 = vpop.permute.xlu2 %1460  ;;  %v2416_v17 = vld [vmem:[#allocation3 + $0x24] sm:$0xf0] }
 0x654   : > { %1463 = vst.msk [vmem:[#allocation3 + $0x8] sm:$0xf] %vm1456_vm15, %v1461_v1 }
 0x659   : > { %v1521_v2 = vpop.permute.xlu0 %1520 }
 0x65a   : > { %1523 = vst.msk [vmem:[#allocation3 + $0x38] sm:$0xf] %vm1456_vm15, %v1521_v2 }
 0x65b   : > { %v1534_v3 = vpop.permute.xlu1 %1533  ;;  %v2414_v22 = vld [vmem:[#allocation3 + $0x4] sm:$0xf0] }
 0x65c   : > { %1536 = vst.msk [vmem:[#allocation3 + $0x40] sm:$0xf] %vm1456_vm15, %v1534_v3  ;;  %v2324_v24 = vor.u32 %v2414_v22, %v2323_v21 }
 0x661   : > { %v1474_v5 = vpop.permute.xlu0 %1473  ;;  %v2417_v12 = vld [vmem:[#allocation3 + $0x34] sm:$0xf0] }
 0x662   : > { %1476 = vst.msk [vmem:[#allocation3 + $0x10] sm:$0xf] %vm1456_vm15, %v1474_v5  ;;  %v2336_v15 = vor.u32 %v2417_v12, %v2335_v13 }
 0x663   : > { %v1491_v6 = vpop.permute.xlu1 %1490  ;;  %v1547_v7 = vld [vmem:[#allocation3 + $0x40] sm:$0xf] }
 0x664   : > { %1493 = vst.msk [vmem:[#allocation3 + $0x20] sm:$0xf] %vm1456_vm15, %v1491_v6  ;;  %v1582_v9 = vunpack.c.l.b16 %v1547_v7  ;;  %v1783_v7 = vld [vmem:[%s3052_s10] sm:$0xff] }
 0x666   : > { %v1587_v10 = vpack.c.b16 %v1582_v9, %v1582_v9 }
 0x668   : > { %v1596_v11 = vsel %vm572_vm8, %v1587_v10, 0  ;;  %vm1622_vm8 = vcmask 597064  }
 0x669   : > { %1601 = vmatpush.bf16.msra.mxu2 %v1596_v11  ;;  %v2327_v19 = vld [vmem:[#allocation3 + $0x10] sm:$0xf]  ;;  %v1553_v26 = vpop.permute.xlu0 %1552 }
 0x66b   : > { %v1487_v14 = vpop.permute.xlu1 %1486  ;;  %v2331_v16 = vld [vmem:[#allocation3 + $0x20] sm:$0xf] }
 0x66c   : > { %1489 = vst.msk [vmem:[#allocation3 + $0x18] sm:$0xf] %vm1456_vm15, %v1487_v14  ;;  %v2332_v18 = vor.u32 %v2416_v17, %v2331_v16 }
 0x66d   : > { %1602 = vmatpush.bf16.msra.mxu2 %v2336_v15 }
 0x671   : > { %1603 = vmatpush.bf16.msra.mxu2 %v2332_v18 }
 0x673   : > { %v2415_v20 = vld [vmem:[#allocation3 + $0x14] sm:$0xf0]  ;;  %v1558_v30 = vpop.permute.xlu1 %1557 }
 0x674   : > { %v2328_v23 = vor.u32 %v2415_v20, %v2327_v19 }
 0x676   : > { %1604 = vmatpush.bf16.msra.mxu2 %v2328_v23 }
 0x67a   : > { %1605 = vmatpush.bf16.msra.mxu2 %v2324_v24 }
 0x67b   : > { %v1719_v41 = vpop.permute.xlu1 %1718 }
 0x67d   : > { %2337 = vmatmul.msk.bf16.vlgmr.msra.gmra.mxu2 %vm1102_vm0, %v2413_v25  ;;  %vm1891_vm0 = vcmask 523264  }
 0x683   : > { %v1651_v60 = vpop.permute.xlu1 %1650 }
 0x700   : > { %v1607_v27 = vpop.f32.mrf.mxu2 }
 0x701   : > { %v1608_v28 = vadd.f32 %v1607_v27, %v1553_v26 }
 0x703   : > { %v1612_v29 = vmax.f32 %v1608_v28, 0.0 }
 0x705   : > { %1616 = vrot.lane.b32.xlu2 %v1612_v29, %s3103_s30 }
 0x708   : > { %v1609_v31 = vpop.f32.mrf.mxu2 }
 0x709   : > { %v1610_v32 = vadd.f32 %v1609_v31, %v1558_v30  ;;  %v1784_v31 = vld [vmem:[%s3052_s10 + $0x8] sm:$0xff] }
 0x70b   : > { %v1613_v34 = vmax.f32 %v1610_v32, 0.0 }
 0x70d   : > { %1618 = vrot.lane.b32.xlu0 %v1613_v34, %s3103_s30  ;;  %1698 = vrot.lane.b32.xlu2 %v2481_v33, %s3104_s23 }
 0x715   : > { %1670 = vrot.lane.b32.xlu0 %v2482_v35, %s3105_s27  ;;  %1746 = vrot.lane.b32.xlu2 %v2483_v36, %s3099_s19  ;;  %s3106_s19 = smov 118   ;;  %s3108_s27 = smov 120  }
 0x75f   : > { %v1617_v37 = vpop.permute.xlu2 %1616 }
 0x760   : > { %1623 = vst.msk [vmem:[#allocation2] sm:$0xff] %vm1622_vm8, %v1617_v37 }
 0x767   : > { %v1625_v39 = vld [vmem:[#allocation2] sm:$0xff]  ;;  %v1699_v40 = vpop.permute.xlu2 %1698 }
 0x768   : > { %v1629_v42 = vmul.f32 %v2484_v38, %v1625_v39  ;;  %v1701_v43 = vmul.f32 %v1699_v40, %v1625_v39  ;;  %v1635_v44 = vpack.c.bf16 %v1625_v39, %v1625_v39  ;;  %v1721_v45 = vmul.f32 %v1719_v41, %v1625_v39 }
 0x769   : > { %v1653_v62 = vmul.f32 %v1651_v60, %v1625_v39 }
 0x76a   : > { %v1631_v46 = vpack.c.bf16 %v1629_v42, %v1629_v42  ;;  %v1703_v47 = vpack.c.bf16 %v1701_v43, %v1701_v43  ;;  %1735 = vrot.lane.b32.xlu0 %v1635_v44, %s3102_s29  ;;  %v1723_v48 = vpack.c.bf16 %v1721_v45, %v1721_v45 }
 0x76b   : > { %v1655_v1 = vpack.c.bf16 %v1653_v62, %v1653_v62 }
 0x76c   : > { %1633 = vst.msk [vmem:[#allocation3] sm:$0xf] %vm1456_vm15, %v1631_v46  ;;  %1707 = vrot.lane.b32.xlu1 %v1703_v47, %s3106_s19  ;;  %1727 = vrot.lane.b32.xlu2 %v1723_v48, %s3097_s28 }
 0x76f   : > { %v1747_v4 = vpop.permute.xlu2 %1746 }
 0x770   : > { %v1749_v5 = vmul.f32 %v1747_v4, %v1625_v39 }
 0x772   : > { %v1751_v6 = vpack.c.bf16 %v1749_v5, %v1749_v5 }
 0x77f   : > { %v1619_v49 = vpop.permute.xlu0 %1618 }
 0x780   : > { %1624 = vst.msk [vmem:[#allocation2 + $0x18] sm:$0xff] %vm1622_vm8, %v1619_v49  ;;  %v2340_v49 = vld [vmem:[%s3051_s9] sm:$0xf] }
 0x787   : > { %v1626_v50 = vld [vmem:[#allocation2 + $0x18] sm:$0xff]  ;;  %v1671_v58 = vpop.permute.xlu0 %1670 }
 0x788   : > { %v1630_v51 = vmul.f32 %v2484_v38, %v1626_v50  ;;  %v1636_v52 = vpack.c.bf16 %v1626_v50, %v1626_v50  ;;  %v1722_v53 = vmul.f32 %v1719_v41, %v1626_v50  ;;  %v1702_v54 = vmul.f32 %v1699_v40, %v1626_v50 }
 0x789   : > { %v1673_v59 = vmul.f32 %v1671_v58, %v1625_v39  ;;  %v1674_v63 = vmul.f32 %v1671_v58, %v1626_v50  ;;  %v1654_v0 = vmul.f32 %v1651_v60, %v1626_v50  ;;  %v1750_v8 = vmul.f32 %v1747_v4, %v1626_v50  ;;  %v2419_v50 = vld [vmem:[%s3051_s9 + $0x4] sm:$0xf0] }
 0x78a   : > { %v1632_v55 = vpack.c.bf16 %v1630_v51, %v1630_v51  ;;  %1737 = vrot.lane.b32.xlu1 %v1636_v52, %s3102_s29  ;;  %v1724_v56 = vpack.c.bf16 %v1722_v53, %v1722_v53  ;;  %v1704_v57 = vpack.c.bf16 %v1702_v54, %v1702_v54  ;;  %v2348_v51 = vld [vmem:[#allocation3] sm:$0xf]  ;;  %v2341_v53 = vor.u32 %v2419_v50, %v2340_v49  ;;  %v2418_v54 = vld [vmem:[%s3051_s9 + $0x4] sm:$0xf] }
 0x78b   : > { %v1675_v61 = vpack.c.bf16 %v1673_v59, %v1673_v59  ;;  %v1676_v2 = vpack.c.bf16 %v1674_v63, %v1674_v63  ;;  %v1656_v3 = vpack.c.bf16 %v1654_v0, %v1654_v0  ;;  %v1752_v9 = vpack.c.bf16 %v1750_v8, %v1750_v8 }
 0x78c   : > { %1634 = vst.msk [vmem:[#allocation3 + $0x8] sm:$0xf] %vm1456_vm15, %v1632_v55  ;;  %1729 = vrot.lane.b32.xlu0 %v1724_v56, %s3097_s28  ;;  %1709 = vrot.lane.b32.xlu2 %v1704_v57, %s3106_s19  ;;  %v2342_v55 = vld [vmem:[%s3051_s9 + $0x8] sm:$0xf0] }
 0x78d   : > { %v2345_v59 = vor.u32 %v2418_v54, %v2342_v55 }
 0x792   : > { %1689 = vrot.lane.b32.xlu1 %v1636_v52, %s3107_s26 }
 0x793   : > { %v2420_v48 = vld [vmem:[#allocation3 + $0x4] sm:$0xf0] }
 0x794   : > { %1687 = vrot.lane.b32.xlu0 %v1635_v44, %s3107_s26  ;;  %1679 = vrot.lane.b32.xlu2 %v1675_v61, %s3108_s27 }
 0x79a   : > { %1659 = vrot.lane.b32.xlu1 %v1655_v1, %s3094_s20 }
 0x79c   : > { %1681 = vrot.lane.b32.xlu0 %v1676_v2, %s3108_s27  ;;  %1661 = vrot.lane.b32.xlu2 %v1656_v3, %s3094_s20  ;;  %s3110_s20 = smov 17  }
 0x7a2   : > { %1641 = vrot.lane.b32.xlu1 %v1636_v52, %s3098_s22  ;;  %v2349_v52 = vor.u32 %v2420_v48, %v2348_v51 }
 0x7a4   : > { %1639 = vrot.lane.b32.xlu0 %v1635_v44, %s3098_s22  ;;  %1755 = vrot.lane.b32.xlu2 %v1751_v6, %s3096_s21 }
 0x7aa   : > { %1787 = vperm.xlu1 %2470, %v1783_v7  }
 0x7ac   : > { %1757 = vrot.lane.b32.xlu0 %v1752_v9, %s3096_s21  ;;  %1792 = vperm.xlu2 %2472, %v1784_v31   ;;  %s519_s21 = scalar_lea.vmem %s3057_s15, %s2798_s16 }
 0x7c6   : > { %v1728_v10 = vpop.permute.xlu2 %1727 }
 0x7c7   : > { %1733 = vst.msk [vmem:[#allocation3 + $0x60] sm:$0xf] %vm1456_vm15, %v1728_v10 }
 0x7ce   : > { %v2372_v24 = vld [vmem:[#allocation3 + $0x60] sm:$0xf] }
 0x7dc   : > { %v1736_v11 = vpop.permute.xlu0 %1735 }
 0x7dd   : > { %1741 = vst.msk [vmem:[#allocation3 + $0x70] sm:$0xf] %vm1456_vm15, %v1736_v11 }
 0x7de   : > { %v1708_v12 = vpop.permute.xlu1 %1707 }
 0x7df   : > { %1713 = vst.msk [vmem:[#allocation3 + $0x50] sm:$0xf] %vm1456_vm15, %v1708_v12  ;;  %v1914_v12 = vld [vmem:[%s3054_s12] sm:$0x7f] }
 0x7e0   : > { %2383 = vmatpush.msk.msra.mxu1 %vm1166_vm2, %v1914_v12 }
 0x7e4   : > { %v2376_v20 = vld [vmem:[#allocation3 + $0x70] sm:$0xf] }
 0x7e6   : > { %v1710_v13 = vpop.permute.xlu2 %1709  ;;  %v2368_v29 = vld [vmem:[#allocation3 + $0x50] sm:$0xf] }
 0x7e7   : > { %1714 = vst.msk [vmem:[#allocation3 + $0x58] sm:$0xf] %vm1456_vm15, %v1710_v13 }
 0x7ee   : > { %v1680_v14 = vpop.permute.xlu2 %1679  ;;  %v2425_v27 = vld [vmem:[#allocation3 + $0x54] sm:$0xf0] }
 0x7ef   : > { %1685 = vst.msk [vmem:[#allocation3 + $0x30] sm:$0xf] %vm1456_vm15, %v1680_v14  ;;  %v2369_v30 = vor.u32 %v2425_v27, %v2368_v29 }
 0x7f6   : > { %v1662_v15 = vpop.permute.xlu2 %1661  ;;  %v2360_v38 = vld [vmem:[#allocation3 + $0x30] sm:$0xf] }
 0x7f7   : > { %1666 = vst.msk [vmem:[#allocation3 + $0x28] sm:$0xf] %vm1456_vm15, %v1662_v15  ;;  %v1959_v15 = vld [vmem:[%s3054_s12] sm:$0x7f] }
 0x7fc   : > { %v1738_v16 = vpop.permute.xlu1 %1737 }
 0x7fd   : > { %1742 = vst.msk [vmem:[#allocation3 + $0x78] sm:$0xf] %vm1456_vm15, %v1738_v16 }
 0x7fe   : > { %v1756_v17 = vpop.permute.xlu2 %1755  ;;  %v1730_v18 = vpop.permute.xlu0 %1729  ;;  %v2422_v42 = vld [vmem:[#allocation3 + $0x24] sm:$0xf0] }
 0x7ff   : > { %1761 = vst.msk [vmem:[#allocation3 + $0x80] sm:$0xf] %vm1456_vm15, %v1756_v17 }
 0x800   : > { %1734 = vst.msk [vmem:[#allocation3 + $0x68] sm:$0xf] %vm1456_vm15, %v1730_v18  ;;  %v2005_v18 = vld [vmem:[%s3054_s12] sm:$0x7f] }
 0x801   : > { %2389 = vmatpush.msk.msrb.mxu1 %vm1166_vm2, %v2005_v18 }
 0x804   : > { %v1690_v19 = vpop.permute.xlu1 %1689  ;;  %v2427_v21 = vld [vmem:[#allocation3 + $0x74] sm:$0xf0] }
 0x805   : > { %1694 = vst.msk [vmem:[#allocation3 + $0x48] sm:$0xf] %vm1456_vm15, %v1690_v19  ;;  %v2377_v22 = vor.u32 %v2427_v21, %v2376_v20  ;;  %v2051_v19 = vld [vmem:[%s3054_s12] sm:$0x7f] }
 0x806   : > { %v1688_v23 = vpop.permute.xlu0 %1687  ;;  %v2380_v56 = vld [vmem:[#allocation3 + $0x80] sm:$0xf]  ;;  %v1793_v2 = vpop.permute.xlu2 %1792  ;;  %2392 = vmatpush.msk.msrb.mxu2 %vm1166_vm2, %v2051_v19 }
 0x807   : > { %1861 = vmatpush.bf16.msra.mxu3 %v2377_v22  ;;  %1693 = vst.msk [vmem:[#allocation3 + $0x40] sm:$0xf] %vm1456_vm15, %v1688_v23  ;;  %v2426_v25 = vld [vmem:[#allocation3 + $0x64] sm:$0xf0] }
 0x808   : > { %v2373_v26 = vor.u32 %v2426_v25, %v2372_v24 }
 0x80b   : > { %1862 = vmatpush.bf16.msra.mxu3 %v2373_v26 }
 0x80c   : > { %v1660_v28 = vpop.permute.xlu1 %1659  ;;  %v2424_v34 = vld [vmem:[#allocation3 + $0x44] sm:$0xf0] }
 0x80d   : > { %1665 = vst.msk [vmem:[#allocation3 + $0x20] sm:$0xf] %vm1456_vm15, %v1660_v28 }
 0x80e   : > { %v1682_v32 = vpop.permute.xlu0 %1681  ;;  %v2364_v33 = vld [vmem:[#allocation3 + $0x40] sm:$0xf] }
 0x80f   : > { %1863 = vmatpush.bf16.msra.mxu3 %v2369_v30  ;;  %1686 = vst.msk [vmem:[#allocation3 + $0x38] sm:$0xf] %vm1456_vm15, %v1682_v32  ;;  %v2365_v35 = vor.u32 %v2424_v34, %v2364_v33 }
 0x813   : > { %1864 = vmatpush.bf16.msra.mxu3 %v2365_v35 }
 0x814   : > { %v1642_v36 = vpop.permute.xlu1 %1641  ;;  %v2356_v41 = vld [vmem:[#allocation3 + $0x20] sm:$0xf] }
 0x815   : > { %1646 = vst.msk [vmem:[#allocation3 + $0x18] sm:$0xf] %vm1456_vm15, %v1642_v36  ;;  %v2357_v43 = vor.u32 %v2422_v42, %v2356_v41 }
 0x816   : > { %v1640_v37 = vpop.permute.xlu0 %1639  ;;  %v2423_v39 = vld [vmem:[#allocation3 + $0x34] sm:$0xf0] }
 0x817   : > { %1645 = vst.msk [vmem:[#allocation3 + $0x10] sm:$0xf] %vm1456_vm15, %v1640_v37  ;;  %v2361_v40 = vor.u32 %v2423_v39, %v2360_v38 }
 0x819   : > { %1865 = vmatpush.bf16.msra.mxu3 %v2361_v40 }
 0x81c   : > { %v2421_v46 = vld [vmem:[#allocation3 + $0x14] sm:$0xf0]  ;;  %v1788_v60 = vpop.permute.xlu1 %1787 }
 0x81d   : > { %1866 = vmatpush.bf16.msra.mxu3 %v2357_v43 }
 0x81e   : > { %v1758_v44 = vpop.permute.xlu0 %1757  ;;  %v2352_v45 = vld [vmem:[#allocation3 + $0x10] sm:$0xf] }
 0x81f   : > { %1762 = vst.msk [vmem:[#allocation3 + $0x88] sm:$0xf] %vm1456_vm15, %v1758_v44  ;;  %v2353_v47 = vor.u32 %v2421_v46, %v2352_v45 }
 0x821   : > { %1867 = vmatpush.bf16.msra.mxu3 %v2353_v47 }
 0x825   : > { %1868 = vmatpush.bf16.msra.mxu3 %v2349_v52 }
 0x826   : > { %v2428_v57 = vld [vmem:[#allocation3 + $0x84] sm:$0xf0] }
 0x827   : > { %v2381_v58 = vor.u32 %v2428_v57, %v2380_v56 }
 0x828   : > { %1869 = vmatmul.bf16.vlgmr.msra.gmra.mxu3 %v2341_v53 }
 0x829   : > { %1882 = vmatpush.bf16.msra.mxu0 %v2381_v58 }
 0x82c   : > { %2382 = vmatmul.msk.bf16.vlgmr.msra.gmra.mxu0 %vm618_vm6, %v2345_v59 }
 0x82d   : > { %2386 = vmatpush.msk.msrb.mxu0 %vm1166_vm2, %v1959_v15  ;;  %vm1956_vm2 = vcmask 72744  }
 0x8a9   : > { %v1884_v61 = vpop.f32.mrf.mxu0 }
 0x8ab   : > { %v1870_v62 = vpop.f32.mrf.mxu3 }
 0x8ac   : > { %v1871_v63 = vadd.f32 %v1870_v62, %v1788_v60 }
 0x8ae   : > { %v1885_v0 = vadd.f32 %v1884_v61, %v1871_v63 }
 0x8b0   : > { %v1889_v1 = vmax.f32 %v1885_v0, 0.0 }
 0x8b1   : > { %v1886_v5 = vpop.f32.mrf.mxu0 }
 0x8b2   : > { %1896 = vrot.lane.b32.xlu0 %v1889_v1, %s3108_s27  ;;  %1892 = vst.msk [vmem:[%s519_s21] sm:$0xff] %vm1891_vm0, %v1889_v1 }
 0x8b3   : > { %v1872_v3 = vpop.f32.mrf.mxu3 }
 0x8b4   : > { %v1873_v4 = vadd.f32 %v1872_v3, %v1793_v2 }
 0x8b6   : > { %v1887_v6 = vadd.f32 %v1886_v5, %v1873_v4 }
 0x8b8   : > { %v1890_v7 = vmax.f32 %v1887_v6, 0.0 }
 0x8ba   : > { %1898 = vrot.lane.b32.xlu1 %v1890_v7, %s3108_s27  ;;  %1893 = vst.msk [vmem:[%s519_s21 + $0x8] sm:$0xff] %vm1891_vm0, %v1890_v7  ;;  %s2523_s27 = smov 80  }
 0x924   : > { %v1897_v8 = vpop.permute.xlu0 %1896 }
 0x925   : > { %v1902_v9 = vmax.f32 %v1889_v1, %v1897_v8 }
 0x927   : > { %1906 = vrot.lane.b32.xlu2 %v1902_v9, %s3098_s22 }
 0x92c   : > { %v1899_v10 = vpop.permute.xlu1 %1898 }
 0x92d   : > { %v1903_v11 = vmax.f32 %v1890_v7, %v1899_v10 }
 0x92f   : > { %1908 = vrot.lane.b32.xlu0 %v1903_v11, %s3098_s22 }
 0x981   : > { %v1907_v13 = vpop.permute.xlu2 %1906 }
 0x982   : > { %v1912_v14 = vmax.f32 %v1902_v9, %v1907_v13 }
 0x984   : > { %2006 = vrot.lane.b32.xlu0 %v1912_v14, %s3109_s25  ;;  %1960 = vrot.lane.b32.xlu2 %v1912_v14, %s3097_s28 }
 0x985   : > { %2052 = vrot.lane.b32.xlu1 %v1912_v14, %s2523_s27  ;;  %2384 = vmatmul.msk.f32.vlgmr.msra.gmra.mxu1 %vm1915_vm4, %v1912_v14 }
 0x9a1   : > { %v1909_v16 = vpop.permute.xlu0 %1908 }
 0x9a2   : > { %v1913_v17 = vmax.f32 %v1903_v11, %v1909_v16 }
 0x9a4   : > { %2008 = vrot.lane.b32.xlu0 %v1913_v17, %s3109_s25  ;;  %1962 = vrot.lane.b32.xlu2 %v1913_v17, %s3097_s28  ;;  %s2524_s28 = smov 5  }
 0x9a5   : > { %2054 = vrot.lane.b32.xlu1 %v1913_v17, %s2523_s27  ;;  %2385 = vmatmul.msk.f32.gmra.mxu1 %vm1915_vm4, %v1913_v17 }
 0x9de   : > { %v1961_v20 = vpop.permute.xlu2 %1960 }
 0x9df   : > { %2387 = vmatmul.msk.f32.vlgmr.msrb.gmra.mxu0 %vm1915_vm4, %v1961_v20 }
 0x9f6   : > { %v2007_v21 = vpop.permute.xlu0 %2006 }
 0x9f7   : > { %v2053_v22 = vpop.permute.xlu1 %2052  ;;  %2390 = vmatmul.msk.f32.vlgmr.msrb.gmra.mxu1 %vm1915_vm4, %v2007_v21 }
 0x9f8   : > { %2393 = vmatmul.msk.f32.vlgmr.msrb.gmra.mxu2 %vm1915_vm4, %v2053_v22 }
 0x9fe   : > { %v1963_v23 = vpop.permute.xlu2 %1962 }
 0x9ff   : > { %2388 = vmatmul.msk.f32.gmra.mxu0 %vm1915_vm4, %v1963_v23 }
 0xa02   : > { %v1942_v24 = vpop.f32.mrf.mxu1 }
 0xa03   : > { %1950 = vrot.lane.b32.xlu1 %v1942_v24, %s2524_s28 }
 0xa16   : > { %v2009_v25 = vpop.permute.xlu0 %2008 }
 0xa17   : > { %v2055_v26 = vpop.permute.xlu1 %2054  ;;  %2391 = vmatmul.msk.f32.gmra.mxu1 %vm1915_vm4, %v2009_v25 }
 0xa18   : > { %2394 = vmatmul.msk.f32.gmra.mxu2 %vm1915_vm4, %v2055_v26 }
 0xa22   : > { %v1945_v27 = vpop.f32.mrf.mxu1 }
 0xa23   : > { %1952 = vrot.lane.b32.xlu2 %v1945_v27, %s2524_s28 }
 0xa5c   : > { %v1988_v28 = vpop.f32.mrf.mxu0 }
 0xa5d   : > { %1996 = vrot.lane.b32.xlu0 %v1988_v28, %s3103_s30 }
 0xa74   : > { %v2034_v29 = vpop.f32.mrf.mxu1 }
 0xa75   : > { %v1951_v30 = vpop.permute.xlu1 %1950  ;;  %2042 = vrot.lane.b32.xlu2 %v2034_v29, %s2525_s17 }
 0xa76   : > { %1957 = vst.msk [vmem:[#allocation2] sm:$0xff] %vm1956_vm2, %v1951_v30 }
 0xa7b   : > { %v2080_v33 = vpop.f32.mrf.mxu2 }
 0xa7c   : > { %v1991_v31 = vpop.f32.mrf.mxu0 }
 0xa7d   : > { %v1953_v32 = vpop.permute.xlu2 %1952  ;;  %1998 = vrot.lane.b32.xlu1 %v1991_v31, %s3103_s30  ;;  %s2526_s30 = smov 123  }
 0xa7e   : > { %1958 = vst.msk [vmem:[#allocation2 + $0x18] sm:$0xff] %vm1956_vm2, %v1953_v32 }
 0xa85   : > { %2088 = vrot.lane.b32.xlu1 %v2080_v33, %s3110_s20 }
 0xa94   : > { %v2037_v34 = vpop.f32.mrf.mxu1 }
 0xa95   : > { %2044 = vrot.lane.b32.xlu0 %v2037_v34, %s2525_s17 }
 0xa9b   : > { %v2083_v35 = vpop.f32.mrf.mxu2 }
 0xa9c   : > { %2090 = vrot.lane.b32.xlu2 %v2083_v35, %s3110_s20 }
 0xacf   : > { %v2043_v36 = vpop.permute.xlu2 %2042  ;;  %v1997_v37 = vpop.permute.xlu0 %1996 }
 0xad0   : > { %2003 = vst.msk [vmem:[#allocation2] sm:$0xff] %vm2002_vm5, %v1997_v37 }
 0xad1   : > { %2049 = vst.msk [vmem:[#allocation2] sm:$0xff] %vm2048_vm7, %v2043_v36 }
 0xaef   : > { %v1999_v38 = vpop.permute.xlu1 %1998 }
 0xaf0   : > { %2004 = vst.msk [vmem:[#allocation2 + $0x18] sm:$0xff] %vm2002_vm5, %v1999_v38 }
 0xaf6   : > { %v2091_v42 = vpop.permute.xlu2 %2090 }
 0xaf7   : > { %v2089_v39 = vpop.permute.xlu1 %2088 }
 0xaf8   : > { %2095 = vst.msk [vmem:[#allocation2] sm:$0xff] %vm2094_vm9, %v2089_v39 }
 0xaff   : > { %v2097_v40 = vld [vmem:[#allocation2] sm:$0xff] }
 0xb00   : > { %2101 = vrot.lane.b32.xlu0 %v2097_v40, %s2526_s30 }
 0xb07   : > { %v2045_v41 = vpop.permute.xlu0 %2044 }
 0xb08   : > { %2050 = vst.msk [vmem:[#allocation2 + $0x18] sm:$0xff] %vm2048_vm7, %v2045_v41 }
 0xb09   : > { %2096 = vst.msk [vmem:[#allocation2 + $0x18] sm:$0xff] %vm2094_vm9, %v2091_v42 }
 0xb10   : > { %v2098_v43 = vld [vmem:[#allocation2 + $0x18] sm:$0xff] }
 0xb11   : > { %2103 = vrot.lane.b32.xlu1 %v2098_v43, %s2526_s30 }
 0xb72   : > { %v2102_v44 = vpop.permute.xlu0 %2101 }
 0xb73   : > { %2107 = vst.msk [vmem:[%s509_s24] sm:$0xff] %vm618_vm6, %v2102_v44 }
 0xb83   : > { %v2104_v45 = vpop.permute.xlu1 %2103 }
 0xb84   : > { %2108 = vst.msk [vmem:[%s509_s24 + $0x8] sm:$0xff] %vm618_vm6, %v2104_v45 }
 0xb85 PF: > { %s26_s18 = sadd.s32 1, %s2492_s18  }
 0xb86   : > { %p23_p4 = scmp.ge.s32.totalorder %s26_s18, 4  }
 0xb88   :  { %25 = sbr.rel (!%p23_p4) target bundleno = 3 (0x3), region = 127 }

</bundles_post_ra>
